<compile_context>
chip_gen: v5e
topology: v5e:2x2
jax: 0.10.0
libtpu: 0.0.40
codegen_flags: <defaults>
</compile_context>

<pallas_src>
import functools

import jax
import jax.numpy as jnp
from jax.experimental import pallas as pl
from jax.experimental.pallas import tpu as pltpu

NEG_BIAS = -1e30  # bias for padded action lanes (f32) -> exp underflows to exactly 0


def _round_up(v, m):
    return ((v + m - 1) // m) * m


def net_kernel(x_ref, w1_ref, b1_ref, w2_ref, b2_ref, w3_ref, b3_ref, o_ref):
    x = x_ref[...]

    # Layer 1: Linear + ReLU
    h1 = jnp.dot(x, w1_ref[...], preferred_element_type=jnp.float32) + b1_ref[...]
    h1 = jnp.maximum(h1, 0.0)

    # Layer 2: Linear + ReLU
    h2 = jnp.dot(h1, w2_ref[...], preferred_element_type=jnp.float32) + b2_ref[...]
    h2 = jnp.maximum(h2, 0.0)

    # Layer 3: Linear. Columns beyond action_number have zero weights and a
    # -1e30 bias, so softmax gives them exactly 0 probability.
    logits = jnp.dot(h2, w3_ref[...], preferred_element_type=jnp.float32) + b3_ref[...]

    # Numerically stable softmax over the last axis.
    m = jnp.max(logits, axis=-1, keepdims=True)
    e = jnp.exp(logits - m)
    s = jnp.sum(e, axis=-1, keepdims=True)

    # Approximate reciprocal on the otherwise-idle EUP slot, then one Newton
    # step on the VPU so row sums stay ~1e-6 from 1.
    r = pl.reciprocal(s, approx=True)
    r = r * (2.0 - s * r)

    o_ref[...] = e * r


@functools.partial(jax.jit, static_argnames=("tile_b",))
def net_forward(x, params, *, tile_b=2048):
    """softmax(L3(relu(L2(relu(L1(x)))))), batched over rows of x."""
    w1, b1, w2, b2, w3, b3 = params
    batch, state_number = x.shape
    hidden = w1.shape[1]
    action_number = w3.shape[1]

    # Lane padding for the output: smallest multiple of 8 >= action_number.
    out_pad = _round_up(action_number, 8)
    assert action_number <= out_pad <= 128  # padded-lane trick assumes f32 logits

    # Lane-padded layer-3 params (traced once under jit; fuses with the call).
    w3p = jnp.zeros((hidden, out_pad), jnp.float32).at[:, :action_number].set(w3)
    b3p = jnp.full((1, out_pad), NEG_BIAS, jnp.float32).at[:, :action_number].set(b3)

    # Big batch tiles -> few grid steps. tb is a multiple of 8 (f32 sublane),
    # never larger than the rounded-up batch (single step for small batches),
    # and capped by tile_b (default 2048; <=4096 keeps VMEM well inside v7x's
    # 64 MiB). For very large batches on v7x, pass a smaller tile_b to get an
    # even number of "parallel" steps across the 2 TensorCores.
    tb = max(8, min(_round_up(tile_b, 8), _round_up(batch, 8)))
    padded_batch = pl.cdiv(batch, tb) * tb
    if padded_batch != batch:
        x = jnp.pad(x, ((0, padded_batch - batch), (0, 0)))
    grid = (padded_batch // tb,)

    # Constant index_map -> weights/biases stay resident in VMEM across steps.
    def whole(shape):
        return pl.BlockSpec(shape, lambda i: (0, 0))

    n_param = (state_number * hidden + hidden + hidden * hidden + hidden
               + hidden * out_pad + out_pad)
    cost = pl.CostEstimate(
        flops=2 * padded_batch * (state_number * hidden
                                  + hidden * hidden
                                  + hidden * out_pad),
        transcendentals=padded_batch * (out_pad + 1),
        bytes_accessed=4 * (padded_batch * (state_number + out_pad) + n_param),
    )

    out = pl.pallas_call(
        net_kernel,
        out_shape=jax.ShapeDtypeStruct((padded_batch, out_pad), jnp.float32),
        grid_spec=pltpu.PrefetchScalarGridSpec(
            num_scalar_prefetch=0,
            grid=grid,
            in_specs=[
                pl.BlockSpec((tb, state_number), lambda i: (i, 0)),  # x: tiled over batch
                whole((state_number, hidden)),                       # w1
                whole((1, hidden)),                                  # b1
                whole((hidden, hidden)),                             # w2
                whole((1, hidden)),                                  # b2
                whole((hidden, out_pad)),                            # w3 (lane-padded)
                whole((1, out_pad)),                                 # b3 (lane-padded)
            ],
            out_specs=pl.BlockSpec((tb, out_pad), lambda i: (i, 0)),
        ),
        compiler_params=pltpu.CompilerParams(
            dimension_semantics=("parallel",),   # shard batch tiles across TCs (v7x)
            vmem_limit_bytes=48 * 1024 * 1024,   # safe on v7x (64 MiB physical)
        ),
        cost_estimate=cost,
    )(x, w1, b1, w2, b2, w3p, b3p)

    # Strip batch padding and the (8-wide) lane padding.
    return out[:batch, :action_number]


def net_reference(x, params):
    """Pure-JAX reference (mirrors the PyTorch module)."""
    w1, b1, w2, b2, w3, b3 = params
    h1 = jnp.maximum(x @ w1 + b1, 0.0)
    h2 = jnp.maximum(h1 @ w2 + b2, 0.0)
    return jax.nn.softmax(h2 @ w3 + b3, axis=-1)


def init_params(key, state_number, hidden, action_number):
    # Deterministic init mimicking PyTorch's nn.Linear default:
    # U(-1/sqrt(fan_in), 1/sqrt(fan_in)) for both weight and bias.
    ks = jax.random.split(key, 6)

    def lin(kw, kb, fan_in, fan_out):
        bound = 1.0 / jnp.sqrt(float(fan_in))
        w = jax.random.uniform(kw, (fan_in, fan_out), jnp.float32, -bound, bound)
        b = jax.random.uniform(kb, (1, fan_out), jnp.float32, -bound, bound)
        return w, b

    w1, b1 = lin(ks[0], ks[1], state_number, hidden)
    w2, b2 = lin(ks[2], ks[3], hidden, hidden)
    w3, b3 = lin(ks[4], ks[5], hidden, action_number)
    return (w1, b1, w2, b2, w3, b3)


if __name__ == "__main__":
    # CartPole-like dims: state_number=4, action_number=2.
    state_number = 4
    hidden = 32
    action_number = 2
    batch = 256    # many env steps folded into ONE pallas_call, ONE grid step

    key = jax.random.PRNGKey(0)
    k_params, k_x = jax.random.split(key)

    params = init_params(k_params, state_number, hidden, action_number)
    x = jax.random.normal(k_x, (batch, state_number), jnp.float32)

    pi = net_forward(x, params)
    pi = jax.block_until_ready(pi)

    # Sanity: correct shape, matches pure-JAX reference, valid probabilities.
    assert pi.shape == (batch, action_number)
    ref = net_reference(x, params)
    assert bool(jnp.all(jnp.abs(pi - ref) < 1e-5))
    row_sums = jnp.sum(pi, axis=-1)
    assert bool(jnp.all(jnp.abs(row_sums - 1.0) < 1e-5))
    assert bool(jnp.all(pi >= 0.0))

    print("KERNEL_OK")
</pallas_src>

<mosaic_0001>
module attributes {stable_mosaic.version = 11 : i64} {
  func.func @net_kernel(%arg0: i32, %arg1: memref<256x4xf32, #tpu.memory_space<vmem>>, %arg2: memref<4x32xf32, #tpu.memory_space<vmem>>, %arg3: memref<1x32xf32, #tpu.memory_space<vmem>>, %arg4: memref<32x32xf32, #tpu.memory_space<vmem>>, %arg5: memref<1x32xf32, #tpu.memory_space<vmem>>, %arg6: memref<32x8xf32, #tpu.memory_space<vmem>>, %arg7: memref<1x8xf32, #tpu.memory_space<vmem>>, %arg8: memref<256x8xf32, #tpu.memory_space<vmem>>) attributes {dimension_semantics = [#tpu.dimension_semantics<parallel>], iteration_bounds = array<i64: 1>, scalar_prefetch = 0 : i64, scratch_operands = 0 : i64, tpu.core_type = #tpu.core_type<tc>, window_params = [{transform_indices = @transform_0, window_bounds = array<i64: 256, 4>}, {pipeline_mode = #tpu.pipeline_mode<synchronous>, transform_indices = @transform_1, window_bounds = array<i64: 4, 32>}, {pipeline_mode = #tpu.pipeline_mode<synchronous>, transform_indices = @transform_2, window_bounds = array<i64: 1, 32>}, {pipeline_mode = #tpu.pipeline_mode<synchronous>, transform_indices = @transform_3, window_bounds = array<i64: 32, 32>}, {pipeline_mode = #tpu.pipeline_mode<synchronous>, transform_indices = @transform_4, window_bounds = array<i64: 1, 32>}, {pipeline_mode = #tpu.pipeline_mode<synchronous>, transform_indices = @transform_5, window_bounds = array<i64: 32, 8>}, {pipeline_mode = #tpu.pipeline_mode<synchronous>, transform_indices = @transform_6, window_bounds = array<i64: 1, 8>}, {transform_indices = @transform_7, window_bounds = array<i64: 256, 8>}]} {
    %c0 = arith.constant 0 : index
    %c0_0 = arith.constant 0 : index
    %0 = vector.load %arg1[%c0, %c0_0] : memref<256x4xf32, #tpu.memory_space<vmem>>, vector<256x4xf32>
    %c0_1 = arith.constant 0 : index
    %c0_2 = arith.constant 0 : index
    %1 = vector.load %arg2[%c0_1, %c0_2] : memref<4x32xf32, #tpu.memory_space<vmem>>, vector<4x32xf32>
    %cst = arith.constant dense<0.000000e+00> : vector<256x32xf32>
    %2 = tpu.matmul %0, %1, %cst {dimension_numbers = #tpu.dot_dimension_numbers<[1], [0], [0], [1], [0, 0, 1, 1], [], []>} : vector<256x4xf32>, vector<4x32xf32>, vector<256x32xf32> -> vector<256x32xf32>
    %c0_3 = arith.constant 0 : index
    %c0_4 = arith.constant 0 : index
    %3 = vector.load %arg3[%c0_3, %c0_4] : memref<1x32xf32, #tpu.memory_space<vmem>>, vector<1x32xf32>
    %4 = vector.broadcast %3 : vector<1x32xf32> to vector<256x32xf32>
    %5 = arith.addf %2, %4 : vector<256x32xf32>
    %cst_5 = arith.constant 0.000000e+00 : f32
    %6 = vector.broadcast %cst_5 : f32 to vector<256x32xf32>
    %7 = arith.maximumf %5, %6 : vector<256x32xf32>
    %c0_6 = arith.constant 0 : index
    %c0_7 = arith.constant 0 : index
    %8 = vector.load %arg4[%c0_6, %c0_7] : memref<32x32xf32, #tpu.memory_space<vmem>>, vector<32x32xf32>
    %cst_8 = arith.constant dense<0.000000e+00> : vector<256x32xf32>
    %9 = tpu.matmul %7, %8, %cst_8 {dimension_numbers = #tpu.dot_dimension_numbers<[1], [0], [0], [1], [0, 0, 1, 1], [], []>} : vector<256x32xf32>, vector<32x32xf32>, vector<256x32xf32> -> vector<256x32xf32>
    %c0_9 = arith.constant 0 : index
    %c0_10 = arith.constant 0 : index
    %10 = vector.load %arg5[%c0_9, %c0_10] : memref<1x32xf32, #tpu.memory_space<vmem>>, vector<1x32xf32>
    %11 = vector.broadcast %10 : vector<1x32xf32> to vector<256x32xf32>
    %12 = arith.addf %9, %11 : vector<256x32xf32>
    %cst_11 = arith.constant 0.000000e+00 : f32
    %13 = vector.broadcast %cst_11 : f32 to vector<256x32xf32>
    %14 = arith.maximumf %12, %13 : vector<256x32xf32>
    %c0_12 = arith.constant 0 : index
    %c0_13 = arith.constant 0 : index
    %15 = vector.load %arg6[%c0_12, %c0_13] : memref<32x8xf32, #tpu.memory_space<vmem>>, vector<32x8xf32>
    %cst_14 = arith.constant dense<0.000000e+00> : vector<256x8xf32>
    %16 = tpu.matmul %14, %15, %cst_14 {dimension_numbers = #tpu.dot_dimension_numbers<[1], [0], [0], [1], [0, 0, 1, 1], [], []>} : vector<256x32xf32>, vector<32x8xf32>, vector<256x8xf32> -> vector<256x8xf32>
    %c0_15 = arith.constant 0 : index
    %c0_16 = arith.constant 0 : index
    %17 = vector.load %arg7[%c0_15, %c0_16] : memref<1x8xf32, #tpu.memory_space<vmem>>, vector<1x8xf32>
    %18 = vector.broadcast %17 : vector<1x8xf32> to vector<256x8xf32>
    %19 = arith.addf %16, %18 : vector<256x8xf32>
    %cst_17 = arith.constant dense<0xFF800000> : vector<256xf32>
    %20 = vector.multi_reduction <maximumf>, %19, %cst_17 [1] : vector<256x8xf32> to vector<256xf32>
    %21 = vector.shape_cast %20 : vector<256xf32> to vector<256x1xf32>
    %22 = vector.broadcast %21 : vector<256x1xf32> to vector<256x8xf32>
    %23 = arith.subf %19, %22 : vector<256x8xf32>
    %24 = math.exp %23 : vector<256x8xf32>
    %cst_18 = arith.constant dense<0.000000e+00> : vector<256xf32>
    %25 = vector.multi_reduction <add>, %24, %cst_18 [1] : vector<256x8xf32> to vector<256xf32>
    %26 = vector.shape_cast %25 : vector<256xf32> to vector<256x1xf32>
    %27 = tpu.reciprocal %26 {approx = true} : vector<256x1xf32> -> vector<256x1xf32>
    %28 = arith.mulf %26, %27 : vector<256x1xf32>
    %cst_19 = arith.constant 2.000000e+00 : f32
    %29 = vector.broadcast %cst_19 : f32 to vector<256x1xf32>
    %30 = arith.subf %29, %28 : vector<256x1xf32>
    %31 = arith.mulf %27, %30 : vector<256x1xf32>
    %32 = vector.broadcast %31 : vector<256x1xf32> to vector<256x8xf32>
    %33 = arith.mulf %24, %32 : vector<256x8xf32>
    %c0_20 = arith.constant 0 : index
    %c0_21 = arith.constant 0 : index
    %34 = vector.load %arg8[%c0_20, %c0_21] : memref<256x8xf32, #tpu.memory_space<vmem>>, vector<256x8xf32>
    tpu.vector_store %arg8[%c0_20, %c0_21], %33 {strides = array<i32>} : memref<256x8xf32, #tpu.memory_space<vmem>>, vector<256x8xf32>,
    return
  }
  func.func @transform_0(%arg0: i32) -> (i32, i32) {
    %c0_i32 = arith.constant 0 : i32
    %c0_i32_0 = arith.constant 0 : i32
    return %arg0, %c0_i32 : i32, i32
  }
  func.func @transform_1(%arg0: i32) -> (i32, i32) {
    %c0_i32 = arith.constant 0 : i32
    %c0_i32_0 = arith.constant 0 : i32
    %c0_i32_1 = arith.constant 0 : i32
    return %c0_i32, %c0_i32_0 : i32, i32
  }
  func.func @transform_2(%arg0: i32) -> (i32, i32) {
    %c0_i32 = arith.constant 0 : i32
    %c0_i32_0 = arith.constant 0 : i32
    %c0_i32_1 = arith.constant 0 : i32
    return %c0_i32, %c0_i32_0 : i32, i32
  }
  func.func @transform_3(%arg0: i32) -> (i32, i32) {
    %c0_i32 = arith.constant 0 : i32
    %c0_i32_0 = arith.constant 0 : i32
    %c0_i32_1 = arith.constant 0 : i32
    return %c0_i32, %c0_i32_0 : i32, i32
  }
  func.func @transform_4(%arg0: i32) -> (i32, i32) {
    %c0_i32 = arith.constant 0 : i32
    %c0_i32_0 = arith.constant 0 : i32
    %c0_i32_1 = arith.constant 0 : i32
    return %c0_i32, %c0_i32_0 : i32, i32
  }
  func.func @transform_5(%arg0: i32) -> (i32, i32) {
    %c0_i32 = arith.constant 0 : i32
    %c0_i32_0 = arith.constant 0 : i32
    %c0_i32_1 = arith.constant 0 : i32
    return %c0_i32, %c0_i32_0 : i32, i32
  }
  func.func @transform_6(%arg0: i32) -> (i32, i32) {
    %c0_i32 = arith.constant 0 : i32
    %c0_i32_0 = arith.constant 0 : i32
    %c0_i32_1 = arith.constant 0 : i32
    return %c0_i32, %c0_i32_0 : i32, i32
  }
  func.func @transform_7(%arg0: i32) -> (i32, i32) {
    %c0_i32 = arith.constant 0 : i32
    %c0_i32_0 = arith.constant 0 : i32
    return %arg0, %c0_i32 : i32, i32
  }
}

</mosaic_0001>

<bundles_post_ra>
// kernel: net_forward.1
= control target key start
LH: loop header
LB: loop body
LE: loop exit
PB: predicated region body
PF: predicated region fallthrough
CT: control target
= control target key end

     0   :  { %vm160_vm0 = vcmask 1043456   ;;  %vm63_vm1 = vcmask 31744   ;;  %vm317_vm2 = vcmask 261120   ;;  %vm776_vm3 = vcmask 64512   ;;  %s2316_s1 = inlined_call_operand.vmem [shape: f32[4,32], index: 1, kind: input, shape index: {}]   ;;  %s2317_s0 = inlined_call_operand.vmem [shape: f32[256,4], index: 0, kind: input, shape index: {}]   ;;  %s2318_s2 = inlined_call_operand.vmem [shape: f32[1,32], index: 2, kind: input, shape index: {}]   ;;  %s2319_s3 = inlined_call_operand.vmem [shape: f32[32,32], index: 3, kind: input, shape index: {}]   ;;  %s2320_s4 = inlined_call_operand.vmem [shape: f32[1,32], index: 4, kind: input, shape index: {}]   ;;  %s2321_s5 = inlined_call_operand.vmem [shape: f32[32,8], index: 5, kind: input, shape index: {}]   ;;  %s2322_s6 = inlined_call_operand.vmem [shape: f32[1,8], index: 6, kind: input, shape index: {}]   ;;  %s2323_s7 = inlined_call_operand.vmem [shape: f32[256,8], index: 7, kind: output, shape index: {}]  }
   0x1   :  { %v58_v0 = vld [vmem:[%s2316_s1] sm:$0xf]  ;;  %v27_v2 = vld [vmem:[%s2317_s0 + $0x8] sm:$0xff]  ;;  %v28_v3 = vld [vmem:[%s2317_s0 + $0x10] sm:$0xff] }
   0x2   :  { %v26_v1 = vld [vmem:[%s2317_s0] sm:$0xff]  ;;  %1261 = vmatpush.msk.msra.mxu0 %vm160_vm0, %v58_v0  ;;  %1358 = vmatpush.msk.msra.mxu3 %vm160_vm0, %v58_v0  ;;  %v29_v4 = vld [vmem:[%s2317_s0 + $0x18] sm:$0xff]  ;;  %v31_v6 = vld [vmem:[%s2317_s0 + $0x28] sm:$0xff] }
   0x3   :  { %1262 = vmatmul.msk.f32.vlgmr.msra.gmra.mxu0 %vm63_vm1, %v26_v1  ;;  %v30_v5 = vld [vmem:[%s2317_s0 + $0x20] sm:$0xff]  ;;  %v32_v7 = vld [vmem:[%s2317_s0 + $0x30] sm:$0xff]  ;;  %v33_v8 = vld [vmem:[%s2317_s0 + $0x38] sm:$0xff] }
   0x4   :  { %v34_v9 = vld [vmem:[%s2317_s0 + $0x40] sm:$0xff]  ;;  %v35_v10 = vld [vmem:[%s2317_s0 + $0x48] sm:$0xff]  ;;  %v36_v11 = vld [vmem:[%s2317_s0 + $0x50] sm:$0xff] }
   0x5   :  { %v37_v12 = vld [vmem:[%s2317_s0 + $0x58] sm:$0xff]  ;;  %v311_v14 = vld [vmem:[%s2319_s3 + $0x10] sm:$0xff]  ;;  %v38_v15 = vld [vmem:[%s2317_s0 + $0x60] sm:$0xff] }
   0x6   :  { %v312_v13 = vld [vmem:[%s2319_s3 + $0x18] sm:$0xff]  ;;  %v310_v16 = vld [vmem:[%s2319_s3 + $0x8] sm:$0xff]  ;;  %v309_v17 = vld [vmem:[%s2319_s3] sm:$0xff] }
   0x7   :  { %426 = vmatpush.msra.mxu1 %v312_v13  ;;  %1359 = vmatpush.msrb.mxu3 %v312_v13  ;;  %v39_v18 = vld [vmem:[%s2317_s0 + $0x68] sm:$0xff]  ;;  %v40_v19 = vld [vmem:[%s2317_s0 + $0x70] sm:$0xff]  ;;  %v41_v20 = vld [vmem:[%s2317_s0 + $0x78] sm:$0xff] }
   0x8   :  { %v1620_v21 = vld [vmem:[%s2318_s2] ss:$0 sm:$0xff]  ;;  %v43_v27 = vld [vmem:[%s2317_s0 + $0x88] sm:$0xff]  ;;  %v44_v31 = vld [vmem:[%s2317_s0 + $0x90] sm:$0xff] }
   0x9   :  { %427 = vmatpush.msra.mxu1 %v311_v14  ;;  %1360 = vmatpush.msrb.mxu3 %v311_v14  ;;  %v42_v23 = vld [vmem:[%s2317_s0 + $0x80] sm:$0xff]  ;;  %v45_v35 = vld [vmem:[%s2317_s0 + $0x98] sm:$0xff]  ;;  %v51_v42 = vld [vmem:[%s2317_s0 + $0xc8] sm:$0xff] }
   0xa   :  { %v46_v39 = vld [vmem:[%s2317_s0 + $0xa0] sm:$0xff]  ;;  %1287 = vmatmul.msk.f32.vlgmr.msra.gmra.mxu3 %vm63_vm1, %v51_v42  ;;  %v47_v44 = vld [vmem:[%s2317_s0 + $0xa8] sm:$0xff]  ;;  %v52_v47 = vld [vmem:[%s2317_s0 + $0xd0] sm:$0xff] }
   0xb   :  { %1263 = vmatmul.msk.f32.gmra.mxu0 %vm63_vm1, %v27_v2  ;;  %428 = vmatpush.msra.mxu1 %v310_v16  ;;  %v48_v49 = vld [vmem:[%s2317_s0 + $0xb0] sm:$0xff]  ;;  %v53_v52 = vld [vmem:[%s2317_s0 + $0xd8] sm:$0xff]  ;;  %v54_v57 = vld [vmem:[%s2317_s0 + $0xe0] sm:$0xff] }
   0xc   :  { %1361 = vmatpush.msrb.mxu3 %v310_v16  ;;  %v49_v54 = vld [vmem:[%s2317_s0 + $0xb8] sm:$0xff]  ;;  %v50_v59 = vld [vmem:[%s2317_s0 + $0xc0] sm:$0xff]  ;;  %v55_v62 = vld [vmem:[%s2317_s0 + $0xe8] sm:$0xff] }
   0xd   :  { %429 = vmatpush.msra.mxu1 %v309_v17  ;;  %v56_v2 = vld [vmem:[%s2317_s0 + $0xf0] sm:$0xff]  ;;  %v559_v16 = vld [vmem:[%s2321_s5] sm:$0xff] }
   0xe   :  { %1362 = vmatpush.msrb.mxu3 %v309_v17  ;;  %v561_v13 = vld [vmem:[%s2321_s5 + $0x10] sm:$0xff] }
  0x12   :  { %1288 = vmatmul.msk.f32.gmra.mxu3 %vm63_vm1, %v52_v47 }
  0x13   :  { %1264 = vmatmul.msk.f32.gmra.mxu0 %vm63_vm1, %v28_v3 }
  0x1a   :  { %1289 = vmatmul.msk.f32.gmra.mxu3 %vm63_vm1, %v53_v52 }
  0x1b   :  { %1265 = vmatmul.msk.f32.gmra.mxu0 %vm63_vm1, %v29_v4 }
  0x22   :  { %1290 = vmatmul.msk.f32.gmra.mxu3 %vm63_vm1, %v54_v57 }
  0x23   :  { %1266 = vmatmul.msk.f32.gmra.mxu0 %vm63_vm1, %v30_v5 }
  0x2a   :  { %1291 = vmatmul.msk.f32.gmra.mxu3 %vm63_vm1, %v55_v62 }
  0x2b   :  { %1267 = vmatmul.msk.f32.gmra.mxu0 %vm63_vm1, %v31_v6  ;;  %v57_v6 = vld [vmem:[%s2317_s0 + $0xf8] sm:$0xff] }
  0x32   :  { %1292 = vmatmul.msk.f32.gmra.mxu3 %vm63_vm1, %v56_v2 }
  0x33   :  { %1268 = vmatmul.msk.f32.gmra.mxu0 %vm63_vm1, %v32_v7 }
  0x3a   :  { %1293 = vmatmul.msk.f32.gmra.mxu3 %vm63_vm1, %v57_v6 }
  0x3b   :  { %1269 = vmatmul.msk.f32.gmra.mxu0 %vm63_vm1, %v33_v8 }
  0x43   :  { %1270 = vmatmul.msk.f32.gmra.mxu0 %vm63_vm1, %v34_v9 }
  0x4b   :  { %1271 = vmatmul.msk.f32.gmra.mxu0 %vm63_vm1, %v35_v10  ;;  %v562_v10 = vld [vmem:[%s2321_s5 + $0x18] sm:$0xff] }
  0x4c   :  { %675 = vmatpush.msra.mxu2 %v562_v10  ;;  %1363 = vmatpush.msra.mxu3 %v562_v10 }
  0x4e   :  { %676 = vmatpush.msra.mxu2 %v561_v13  ;;  %1364 = vmatpush.msra.mxu3 %v561_v13 }
  0x53   :  { %1272 = vmatmul.msk.f32.gmra.mxu0 %vm63_vm1, %v36_v11 }
  0x5b   :  { %1273 = vmatmul.msk.f32.gmra.mxu0 %vm63_vm1, %v37_v12 }
  0x63   :  { %1274 = vmatmul.msk.f32.gmra.mxu0 %vm63_vm1, %v38_v15  ;;  %v560_v15 = vld [vmem:[%s2321_s5 + $0x8] sm:$0xff] }
  0x64   :  { %677 = vmatpush.msra.mxu2 %v560_v15  ;;  %1365 = vmatpush.msra.mxu3 %v560_v15 }
  0x66   :  { %678 = vmatpush.msra.mxu2 %v559_v16  ;;  %1366 = vmatpush.msra.mxu3 %v559_v16 }
  0x6b   :  { %1275 = vmatmul.msk.f32.gmra.mxu0 %vm63_vm1, %v39_v18 }
  0x73   :  { %1276 = vmatmul.msk.f32.gmra.mxu0 %vm63_vm1, %v40_v19 }
  0x7b   :  { %1277 = vmatmul.msk.f32.gmra.mxu0 %vm63_vm1, %v41_v20 }
  0x80   :  { %v181_v22 = vpop.f32.mrf.mxu0 }
  0x81   :  { %v182_v24 = vadd.f32 %v1620_v21, %v181_v22 }
  0x83   :  { %v277_v25 = vmax.f32 %v182_v24, 0.0  ;;  %1278 = vmatmul.msk.f32.gmra.mxu0 %vm63_vm1, %v42_v23 }
  0x85   :  { %1294 = vmatmul.msk.f32.vlgmr.msra.gmra.mxu1 %vm317_vm2, %v277_v25 }
  0x88   :  { %v184_v26 = vpop.f32.mrf.mxu0 }
  0x89   :  { %v185_v28 = vadd.f32 %v1620_v21, %v184_v26 }
  0x8b   :  { %v278_v29 = vmax.f32 %v185_v28, 0.0  ;;  %1279 = vmatmul.msk.f32.gmra.mxu0 %vm63_vm1, %v43_v27  ;;  %v1733_v27 = vld [vmem:[%s2320_s4] ss:$0 sm:$0xff] }
  0x8d   :  { %1295 = vmatmul.msk.f32.gmra.mxu1 %vm317_vm2, %v278_v29  ;;  %v256_v6 = vpop.f32.mrf.mxu3 }
  0x90   :  { %v187_v30 = vpop.f32.mrf.mxu0 }
  0x91   :  { %v188_v32 = vadd.f32 %v1620_v21, %v187_v30 }
  0x93   :  { %v279_v33 = vmax.f32 %v188_v32, 0.0  ;;  %1280 = vmatmul.msk.f32.gmra.mxu0 %vm63_vm1, %v44_v31 }
  0x95   :  { %1296 = vmatmul.msk.f32.gmra.mxu1 %vm317_vm2, %v279_v33 }
  0x98   :  { %v190_v34 = vpop.f32.mrf.mxu0 }
  0x99   :  { %v191_v36 = vadd.f32 %v1620_v21, %v190_v34 }
  0x9b   :  { %v280_v37 = vmax.f32 %v191_v36, 0.0  ;;  %1281 = vmatmul.msk.f32.gmra.mxu0 %vm63_vm1, %v45_v35 }
  0x9d   :  { %1297 = vmatmul.msk.f32.gmra.mxu1 %vm317_vm2, %v280_v37 }
  0xa0   :  { %v193_v38 = vpop.f32.mrf.mxu0 }
  0xa1   :  { %v194_v40 = vadd.f32 %v1620_v21, %v193_v38 }
  0xa3   :  { %v281_v41 = vmax.f32 %v194_v40, 0.0  ;;  %1282 = vmatmul.msk.f32.gmra.mxu0 %vm63_vm1, %v46_v39 }
  0xa5   :  { %1298 = vmatmul.msk.f32.gmra.mxu1 %vm317_vm2, %v281_v41 }
  0xa8   :  { %v196_v43 = vpop.f32.mrf.mxu0 }
  0xa9   :  { %v197_v45 = vadd.f32 %v1620_v21, %v196_v43 }
  0xab   :  { %v282_v46 = vmax.f32 %v197_v45, 0.0  ;;  %1283 = vmatmul.msk.f32.gmra.mxu0 %vm63_vm1, %v47_v44 }
  0xad   :  { %1299 = vmatmul.msk.f32.gmra.mxu1 %vm317_vm2, %v282_v46 }
  0xb0   :  { %v199_v48 = vpop.f32.mrf.mxu0 }
  0xb1   :  { %v200_v50 = vadd.f32 %v1620_v21, %v199_v48 }
  0xb3   :  { %v283_v51 = vmax.f32 %v200_v50, 0.0  ;;  %1284 = vmatmul.msk.f32.gmra.mxu0 %vm63_vm1, %v48_v49 }
  0xb5   :  { %1300 = vmatmul.msk.f32.gmra.mxu1 %vm317_vm2, %v283_v51 }
  0xb8   :  { %v202_v53 = vpop.f32.mrf.mxu0 }
  0xb9   :  { %v203_v55 = vadd.f32 %v1620_v21, %v202_v53 }
  0xbb   :  { %v284_v56 = vmax.f32 %v203_v55, 0.0  ;;  %1285 = vmatmul.msk.f32.gmra.mxu0 %vm63_vm1, %v49_v54 }
  0xbd   :  { %1301 = vmatmul.msk.f32.gmra.mxu1 %vm317_vm2, %v284_v56 }
  0xc0   :  { %v205_v58 = vpop.f32.mrf.mxu0 }
  0xc1   :  { %v206_v60 = vadd.f32 %v1620_v21, %v205_v58 }
  0xc3   :  { %v285_v61 = vmax.f32 %v206_v60, 0.0  ;;  %1286 = vmatmul.msk.f32.gmra.mxu0 %vm63_vm1, %v50_v59 }
  0xc5   :  { %1302 = vmatmul.msk.f32.gmra.mxu1 %vm317_vm2, %v285_v61 }
  0xc8   :  { %v208_v63 = vpop.f32.mrf.mxu0 }
  0xc9   :  { %v209_v0 = vadd.f32 %v1620_v21, %v208_v63 }
  0xcb   :  { %v286_v1 = vmax.f32 %v209_v0, 0.0 }
  0xcd   :  { %1303 = vmatmul.msk.f32.gmra.mxu1 %vm317_vm2, %v286_v1 }
  0xd0   :  { %v211_v3 = vpop.f32.mrf.mxu0 }
  0xd1   :  { %v212_v4 = vadd.f32 %v1620_v21, %v211_v3 }
  0xd3   :  { %v287_v5 = vmax.f32 %v212_v4, 0.0 }
  0xd5   :  { %1304 = vmatmul.msk.f32.gmra.mxu1 %vm317_vm2, %v287_v5 }
  0xd8   :  { %v214_v7 = vpop.f32.mrf.mxu0 }
  0xd9   :  { %v215_v8 = vadd.f32 %v1620_v21, %v214_v7 }
  0xdb   :  { %v288_v9 = vmax.f32 %v215_v8, 0.0 }
  0xdd   :  { %1305 = vmatmul.msk.f32.gmra.mxu1 %vm317_vm2, %v288_v9 }
  0xe0   :  { %v217_v11 = vpop.f32.mrf.mxu0 }
  0xe1   :  { %v218_v12 = vadd.f32 %v1620_v21, %v217_v11 }
  0xe3   :  { %v289_v14 = vmax.f32 %v218_v12, 0.0 }
  0xe5   :  { %1306 = vmatmul.msk.f32.gmra.mxu1 %vm317_vm2, %v289_v14  ;;  %v259_v14 = vpop.f32.mrf.mxu3 }
  0xe8   :  { %v220_v17 = vpop.f32.mrf.mxu0 }
  0xe9   :  { %v221_v18 = vadd.f32 %v1620_v21, %v220_v17 }
  0xeb   :  { %v290_v19 = vmax.f32 %v221_v18, 0.0 }
  0xed   :  { %1307 = vmatmul.msk.f32.gmra.mxu1 %vm317_vm2, %v290_v19 }
  0xf0   :  { %v223_v20 = vpop.f32.mrf.mxu0 }
  0xf1   :  { %v224_v22 = vadd.f32 %v1620_v21, %v223_v20  ;;  %v257_v20 = vadd.f32 %v1620_v21, %v256_v6 }
  0xf3   :  { %v291_v23 = vmax.f32 %v224_v22, 0.0  ;;  %v302_v22 = vmax.f32 %v257_v20, 0.0 }
  0xf5   :  { %1308 = vmatmul.msk.f32.gmra.mxu1 %vm317_vm2, %v291_v23 }
  0xf8   :  { %v226_v24 = vpop.f32.mrf.mxu0 }
  0xf9   :  { %v227_v25 = vadd.f32 %v1620_v21, %v226_v24  ;;  %v262_v24 = vpop.f32.mrf.mxu3 }
  0xfb   :  { %v292_v26 = vmax.f32 %v227_v25, 0.0 }
  0xfd   :  { %1309 = vmatmul.msk.f32.gmra.mxu1 %vm317_vm2, %v292_v26 }
 0x100   :  { %v229_v28 = vpop.f32.mrf.mxu0 }
 0x101   :  { %v230_v29 = vadd.f32 %v1620_v21, %v229_v28  ;;  %v260_v28 = vadd.f32 %v1620_v21, %v259_v14 }
 0x102   :  { %v431_v30 = vpop.f32.mrf.mxu1 }
 0x103   :  { %v293_v31 = vmax.f32 %v230_v29, 0.0  ;;  %v432_v32 = vadd.f32 %v1733_v27, %v431_v30  ;;  %v303_v29 = vmax.f32 %v260_v28, 0.0 }
 0x105   :  { %v527_v33 = vmax.f32 %v432_v32, 0.0  ;;  %1310 = vmatmul.msk.f32.gmra.mxu1 %vm317_vm2, %v293_v31  ;;  %v265_v32 = vpop.f32.mrf.mxu3 }
 0x107   :  { %1326 = vmatmul.msk.f32.vlgmr.msra.gmra.mxu2 %vm317_vm2, %v527_v33 }
 0x108   :  { %v232_v34 = vpop.f32.mrf.mxu0 }
 0x109   :  { %v233_v35 = vadd.f32 %v1620_v21, %v232_v34  ;;  %v263_v34 = vadd.f32 %v1620_v21, %v262_v24 }
 0x10a   :  { %v434_v36 = vpop.f32.mrf.mxu1 }
 0x10b   :  { %v294_v37 = vmax.f32 %v233_v35, 0.0  ;;  %v435_v38 = vadd.f32 %v1733_v27, %v434_v36  ;;  %v304_v35 = vmax.f32 %v263_v34, 0.0 }
 0x10d   :  { %v528_v39 = vmax.f32 %v435_v38, 0.0  ;;  %1311 = vmatmul.msk.f32.gmra.mxu1 %vm317_vm2, %v294_v37 }
 0x10f   :  { %1327 = vmatmul.msk.f32.gmra.mxu2 %vm317_vm2, %v528_v39  ;;  %v266_v39 = vadd.f32 %v1620_v21, %v265_v32 }
 0x110   :  { %v235_v40 = vpop.f32.mrf.mxu0 }
 0x111   :  { %v236_v41 = vadd.f32 %v1620_v21, %v235_v40  ;;  %v268_v40 = vpop.f32.mrf.mxu3 }
 0x112   :  { %v437_v42 = vpop.f32.mrf.mxu1 }
 0x113   :  { %v295_v43 = vmax.f32 %v236_v41, 0.0  ;;  %v438_v44 = vadd.f32 %v1733_v27, %v437_v42  ;;  %v305_v41 = vmax.f32 %v266_v39, 0.0 }
 0x115   :  { %v529_v45 = vmax.f32 %v438_v44, 0.0  ;;  %1312 = vmatmul.msk.f32.gmra.mxu1 %vm317_vm2, %v295_v43 }
 0x117   :  { %1328 = vmatmul.msk.f32.gmra.mxu2 %vm317_vm2, %v529_v45  ;;  %v269_v45 = vadd.f32 %v1620_v21, %v268_v40 }
 0x118   :  { %v238_v46 = vpop.f32.mrf.mxu0 }
 0x119   :  { %v239_v47 = vadd.f32 %v1620_v21, %v238_v46  ;;  %v271_v46 = vpop.f32.mrf.mxu3 }
 0x11a   :  { %v440_v48 = vpop.f32.mrf.mxu1 }
 0x11b   :  { %v296_v49 = vmax.f32 %v239_v47, 0.0  ;;  %v441_v50 = vadd.f32 %v1733_v27, %v440_v48  ;;  %v306_v47 = vmax.f32 %v269_v45, 0.0 }
 0x11d   :  { %v530_v51 = vmax.f32 %v441_v50, 0.0  ;;  %1313 = vmatmul.msk.f32.gmra.mxu1 %vm317_vm2, %v296_v49 }
 0x11f   :  { %1329 = vmatmul.msk.f32.gmra.mxu2 %vm317_vm2, %v530_v51  ;;  %v272_v51 = vadd.f32 %v1620_v21, %v271_v46 }
 0x120   :  { %v241_v52 = vpop.f32.mrf.mxu0 }
 0x121   :  { %v242_v53 = vadd.f32 %v1620_v21, %v241_v52  ;;  %v307_v52 = vmax.f32 %v272_v51, 0.0 }
 0x122   :  { %v443_v54 = vpop.f32.mrf.mxu1 }
 0x123   :  { %v297_v55 = vmax.f32 %v242_v53, 0.0  ;;  %v444_v56 = vadd.f32 %v1733_v27, %v443_v54  ;;  %v274_v54 = vpop.f32.mrf.mxu3 }
 0x125   :  { %v531_v57 = vmax.f32 %v444_v56, 0.0  ;;  %1314 = vmatmul.msk.f32.gmra.mxu1 %vm317_vm2, %v297_v55 }
 0x127   :  { %1330 = vmatmul.msk.f32.gmra.mxu2 %vm317_vm2, %v531_v57  ;;  %v275_v57 = vadd.f32 %v1620_v21, %v274_v54 }
 0x128   :  { %v244_v58 = vpop.f32.mrf.mxu0 }
 0x129   :  { %v245_v59 = vadd.f32 %v1620_v21, %v244_v58  ;;  %v308_v58 = vmax.f32 %v275_v57, 0.0 }
 0x12a   :  { %v446_v60 = vpop.f32.mrf.mxu1 }
 0x12b   :  { %v298_v61 = vmax.f32 %v245_v59, 0.0  ;;  %v447_v62 = vadd.f32 %v1733_v27, %v446_v60 }
 0x12d   :  { %v532_v63 = vmax.f32 %v447_v62, 0.0  ;;  %1315 = vmatmul.msk.f32.gmra.mxu1 %vm317_vm2, %v298_v61 }
 0x12f   :  { %1331 = vmatmul.msk.f32.gmra.mxu2 %vm317_vm2, %v532_v63 }
 0x130   :  { %v247_v0 = vpop.f32.mrf.mxu0 }
 0x131   :  { %v248_v1 = vadd.f32 %v1620_v21, %v247_v0 }
 0x132   :  { %v449_v2 = vpop.f32.mrf.mxu1 }
 0x133   :  { %v299_v3 = vmax.f32 %v248_v1, 0.0  ;;  %v450_v4 = vadd.f32 %v1733_v27, %v449_v2 }
 0x135   :  { %v533_v5 = vmax.f32 %v450_v4, 0.0  ;;  %1316 = vmatmul.msk.f32.gmra.mxu1 %vm317_vm2, %v299_v3 }
 0x137   :  { %1332 = vmatmul.msk.f32.gmra.mxu2 %vm317_vm2, %v533_v5 }
 0x138   :  { %v250_v7 = vpop.f32.mrf.mxu0 }
 0x139   :  { %v251_v8 = vadd.f32 %v1620_v21, %v250_v7 }
 0x13a   :  { %v452_v9 = vpop.f32.mrf.mxu1 }
 0x13b   :  { %v300_v10 = vmax.f32 %v251_v8, 0.0  ;;  %v453_v11 = vadd.f32 %v1733_v27, %v452_v9 }
 0x13d   :  { %v534_v12 = vmax.f32 %v453_v11, 0.0  ;;  %1317 = vmatmul.msk.f32.gmra.mxu1 %vm317_vm2, %v300_v10 }
 0x13f   :  { %1333 = vmatmul.msk.f32.gmra.mxu2 %vm317_vm2, %v534_v12 }
 0x140   :  { %v253_v13 = vpop.f32.mrf.mxu0 }
 0x141   :  { %v254_v15 = vadd.f32 %v1620_v21, %v253_v13  ;;  %v1804_v21 = vld [vmem:[%s2322_s6] ss:$0 sm:$0xff] }
 0x142   :  { %v455_v16 = vpop.f32.mrf.mxu1 }
 0x143   :  { %v301_v17 = vmax.f32 %v254_v15, 0.0  ;;  %v456_v18 = vadd.f32 %v1733_v27, %v455_v16 }
 0x145   :  { %v535_v19 = vmax.f32 %v456_v18, 0.0  ;;  %1318 = vmatmul.msk.f32.vlgmr.msrb.gmra.mxu3 %vm317_vm2, %v301_v17 }
 0x147   :  { %1334 = vmatmul.msk.f32.gmra.mxu2 %vm317_vm2, %v535_v19 }
 0x14a   :  { %v458_v23 = vpop.f32.mrf.mxu1 }
 0x14b   :  { %v459_v25 = vadd.f32 %v1733_v27, %v458_v23 }
 0x14d   :  { %v536_v26 = vmax.f32 %v459_v25, 0.0  ;;  %1319 = vmatmul.msk.f32.gmra.mxu3 %vm317_vm2, %v302_v22 }
 0x14f   :  { %1335 = vmatmul.msk.f32.gmra.mxu2 %vm317_vm2, %v536_v26 }
 0x152   :  { %v461_v30 = vpop.f32.mrf.mxu1 }
 0x153   :  { %v462_v31 = vadd.f32 %v1733_v27, %v461_v30 }
 0x155   :  { %v537_v33 = vmax.f32 %v462_v31, 0.0  ;;  %1320 = vmatmul.msk.f32.gmra.mxu3 %vm317_vm2, %v303_v29 }
 0x157   :  { %1336 = vmatmul.msk.f32.gmra.mxu2 %vm317_vm2, %v537_v33 }
 0x15a   :  { %v464_v36 = vpop.f32.mrf.mxu1 }
 0x15b   :  { %v465_v37 = vadd.f32 %v1733_v27, %v464_v36 }
 0x15d   :  { %v538_v38 = vmax.f32 %v465_v37, 0.0  ;;  %1321 = vmatmul.msk.f32.gmra.mxu3 %vm317_vm2, %v304_v35 }
 0x15f   :  { %1337 = vmatmul.msk.f32.gmra.mxu2 %vm317_vm2, %v538_v38 }
 0x162   :  { %v467_v42 = vpop.f32.mrf.mxu1 }
 0x163   :  { %v468_v43 = vadd.f32 %v1733_v27, %v467_v42 }
 0x165   :  { %v539_v44 = vmax.f32 %v468_v43, 0.0  ;;  %1322 = vmatmul.msk.f32.gmra.mxu3 %vm317_vm2, %v305_v41 }
 0x167   :  { %1338 = vmatmul.msk.f32.gmra.mxu2 %vm317_vm2, %v539_v44 }
 0x16a   :  { %v470_v48 = vpop.f32.mrf.mxu1 }
 0x16b   :  { %v471_v49 = vadd.f32 %v1733_v27, %v470_v48 }
 0x16d   :  { %v540_v50 = vmax.f32 %v471_v49, 0.0  ;;  %1323 = vmatmul.msk.f32.gmra.mxu3 %vm317_vm2, %v306_v47 }
 0x16f   :  { %1339 = vmatmul.msk.f32.gmra.mxu2 %vm317_vm2, %v540_v50 }
 0x172   :  { %v473_v53 = vpop.f32.mrf.mxu1 }
 0x173   :  { %v474_v55 = vadd.f32 %v1733_v27, %v473_v53 }
 0x175   :  { %v541_v56 = vmax.f32 %v474_v55, 0.0  ;;  %1324 = vmatmul.msk.f32.gmra.mxu3 %vm317_vm2, %v307_v52 }
 0x177   :  { %1340 = vmatmul.msk.f32.gmra.mxu2 %vm317_vm2, %v541_v56 }
 0x17a   :  { %v476_v59 = vpop.f32.mrf.mxu1 }
 0x17b   :  { %v477_v60 = vadd.f32 %v1733_v27, %v476_v59 }
 0x17d   :  { %v542_v61 = vmax.f32 %v477_v60, 0.0  ;;  %1325 = vmatmul.msk.f32.gmra.mxu3 %vm317_vm2, %v308_v58 }
 0x17f   :  { %1341 = vmatmul.msk.f32.gmra.mxu2 %vm317_vm2, %v542_v61 }
 0x182   :  { %v479_v62 = vpop.f32.mrf.mxu1 }
 0x183   :  { %v480_v63 = vadd.f32 %v1733_v27, %v479_v62 }
 0x185   :  { %v543_v0 = vmax.f32 %v480_v63, 0.0 }
 0x187   :  { %1342 = vmatmul.msk.f32.gmra.mxu2 %vm317_vm2, %v543_v0 }
 0x18a   :  { %v482_v1 = vpop.f32.mrf.mxu1  ;;  %v680_v2 = vpop.f32.mrf.mxu2 }
 0x18b   :  { %v483_v3 = vadd.f32 %v1733_v27, %v482_v1  ;;  %v1808_v4 = vadd.f32 %v1804_v21, %v680_v2 }
 0x18d   :  { %v544_v5 = vmax.f32 %v483_v3, 0.0  ;;  %v777_v6 = vsel %vm776_vm3, %v1808_v4, -inf }
 0x18e   :  { %778 = vmax.xlane.f32.xlu0 %v777_v6 }
 0x18f   :  { %1343 = vmatmul.msk.f32.gmra.mxu2 %vm317_vm2, %v544_v5 }
 0x192   :  { %v485_v7 = vpop.f32.mrf.mxu1  ;;  %v683_v8 = vpop.f32.mrf.mxu2 }
 0x193   :  { %v486_v9 = vadd.f32 %v1733_v27, %v485_v7  ;;  %v1815_v10 = vadd.f32 %v1804_v21, %v683_v8 }
 0x195   :  { %v545_v11 = vmax.f32 %v486_v9, 0.0  ;;  %v780_v12 = vsel %vm776_vm3, %v1815_v10, -inf }
 0x196   :  { %781 = vmax.xlane.f32.xlu0 %v780_v12 }
 0x197   :  { %1344 = vmatmul.msk.f32.gmra.mxu2 %vm317_vm2, %v545_v11 }
 0x19a   :  { %v488_v13 = vpop.f32.mrf.mxu1  ;;  %v686_v14 = vpop.f32.mrf.mxu2 }
 0x19b   :  { %v489_v15 = vadd.f32 %v1733_v27, %v488_v13  ;;  %v1822_v16 = vadd.f32 %v1804_v21, %v686_v14 }
 0x19d   :  { %v546_v17 = vmax.f32 %v489_v15, 0.0  ;;  %v783_v18 = vsel %vm776_vm3, %v1822_v16, -inf }
 0x19e   :  { %784 = vmax.xlane.f32.xlu1 %v783_v18 }
 0x19f   :  { %1345 = vmatmul.msk.f32.gmra.mxu2 %vm317_vm2, %v546_v17 }
 0x1a2   :  { %v491_v19 = vpop.f32.mrf.mxu1  ;;  %v689_v20 = vpop.f32.mrf.mxu2 }
 0x1a3   :  { %v492_v22 = vadd.f32 %v1733_v27, %v491_v19  ;;  %v1829_v23 = vadd.f32 %v1804_v21, %v689_v20 }
 0x1a5   :  { %v547_v24 = vmax.f32 %v492_v22, 0.0  ;;  %v786_v25 = vsel %vm776_vm3, %v1829_v23, -inf }
 0x1a6   :  { %787 = vmax.xlane.f32.xlu1 %v786_v25 }
 0x1a7   :  { %1346 = vmatmul.msk.f32.gmra.mxu2 %vm317_vm2, %v547_v24 }
 0x1aa   :  { %v494_v26 = vpop.f32.mrf.mxu1  ;;  %v692_v28 = vpop.f32.mrf.mxu2 }
 0x1ab   :  { %v495_v29 = vadd.f32 %v1733_v27, %v494_v26  ;;  %v1836_v30 = vadd.f32 %v1804_v21, %v692_v28 }
 0x1ad   :  { %v548_v31 = vmax.f32 %v495_v29, 0.0  ;;  %v789_v32 = vsel %vm776_vm3, %v1836_v30, -inf }
 0x1ae   :  { %790 = vmax.xlane.f32.xlu2 %v789_v32 }
 0x1af   :  { %1347 = vmatmul.msk.f32.gmra.mxu2 %vm317_vm2, %v548_v31 }
 0x1b2   :  { %v497_v33 = vpop.f32.mrf.mxu1  ;;  %v695_v34 = vpop.f32.mrf.mxu2 }
 0x1b3   :  { %v498_v35 = vadd.f32 %v1733_v27, %v497_v33  ;;  %v1843_v36 = vadd.f32 %v1804_v21, %v695_v34 }
 0x1b5   :  { %v549_v37 = vmax.f32 %v498_v35, 0.0  ;;  %v792_v38 = vsel %vm776_vm3, %v1843_v36, -inf }
 0x1b6   :  { %793 = vmax.xlane.f32.xlu2 %v792_v38 }
 0x1b7   :  { %1348 = vmatmul.msk.f32.gmra.mxu2 %vm317_vm2, %v549_v37 }
 0x1ba   :  { %v500_v39 = vpop.f32.mrf.mxu1  ;;  %v698_v40 = vpop.f32.mrf.mxu2 }
 0x1bb   :  { %v501_v41 = vadd.f32 %v1733_v27, %v500_v39  ;;  %v1850_v42 = vadd.f32 %v1804_v21, %v698_v40 }
 0x1bd   :  { %v550_v43 = vmax.f32 %v501_v41, 0.0  ;;  %v795_v44 = vsel %vm776_vm3, %v1850_v42, -inf }
 0x1be   :  { %796 = vmax.xlane.f32.xlu0 %v795_v44 }
 0x1bf   :  { %1349 = vmatmul.msk.f32.gmra.mxu2 %vm317_vm2, %v550_v43 }
 0x1c2   :  { %v701_v45 = vpop.f32.mrf.mxu2 }
 0x1c3   :  { %v1856_v46 = vadd.f32 %v1804_v21, %v701_v45 }
 0x1c5   :  { %v798_v47 = vsel %vm776_vm3, %v1856_v46, -inf }
 0x1c6   :  { %799 = vmax.xlane.f32.xlu1 %v798_v47 }
 0x1c8   :  { %v503_v48 = vpop.f32.mrf.mxu3 }
 0x1c9   :  { %v504_v49 = vadd.f32 %v1733_v27, %v503_v48 }
 0x1ca   :  { %v704_v50 = vpop.f32.mrf.mxu2 }
 0x1cb   :  { %v551_v51 = vmax.f32 %v504_v49, 0.0  ;;  %v1862_v52 = vadd.f32 %v1804_v21, %v704_v50 }
 0x1cd   :  { %1350 = vmatmul.msk.f32.vlgmr.msra.gmra.mxu3 %vm317_vm2, %v551_v51  ;;  %v801_v53 = vsel %vm776_vm3, %v1862_v52, -inf }
 0x1ce   :  { %802 = vmax.xlane.f32.xlu2 %v801_v53 }
 0x1d0   :  { %v506_v54 = vpop.f32.mrf.mxu3 }
 0x1d1   :  { %v507_v55 = vadd.f32 %v1733_v27, %v506_v54 }
 0x1d2   :  { %v707_v56 = vpop.f32.mrf.mxu2 }
 0x1d3   :  { %v552_v57 = vmax.f32 %v507_v55, 0.0  ;;  %v1869_v58 = vadd.f32 %v1804_v21, %v707_v56 }
 0x1d5   :  { %1351 = vmatmul.msk.f32.gmra.mxu3 %vm317_vm2, %v552_v57  ;;  %v804_v59 = vsel %vm776_vm3, %v1869_v58, -inf }
 0x1d6   :  { %805 = vmax.xlane.f32.xlu0 %v804_v59 }
 0x1d8   :  { %v509_v60 = vpop.f32.mrf.mxu3 }
 0x1d9   :  { %v510_v61 = vadd.f32 %v1733_v27, %v509_v60 }
 0x1da   :  { %v710_v62 = vpop.f32.mrf.mxu2 }
 0x1db   :  { %v553_v63 = vmax.f32 %v510_v61, 0.0  ;;  %v1876_v0 = vadd.f32 %v1804_v21, %v710_v62 }
 0x1dd   :  { %1352 = vmatmul.msk.f32.gmra.mxu3 %vm317_vm2, %v553_v63  ;;  %v807_v1 = vsel %vm776_vm3, %v1876_v0, -inf }
 0x1de   :  { %808 = vmax.xlane.f32.xlu1 %v807_v1 }
 0x1e0   :  { %v512_v2 = vpop.f32.mrf.mxu3 }
 0x1e1   :  { %v513_v3 = vadd.f32 %v1733_v27, %v512_v2 }
 0x1e2   :  { %v713_v5 = vpop.f32.mrf.mxu2 }
 0x1e3   :  { %v554_v6 = vmax.f32 %v513_v3, 0.0  ;;  %v1883_v7 = vadd.f32 %v1804_v21, %v713_v5 }
 0x1e5   :  { %1353 = vmatmul.msk.f32.gmra.mxu3 %vm317_vm2, %v554_v6  ;;  %v810_v8 = vsel %vm776_vm3, %v1883_v7, -inf }
 0x1e6   :  { %811 = vmax.xlane.f32.xlu2 %v810_v8 }
 0x1e8   :  { %v515_v9 = vpop.f32.mrf.mxu3 }
 0x1e9   :  { %v516_v11 = vadd.f32 %v1733_v27, %v515_v9 }
 0x1ea   :  { %v716_v12 = vpop.f32.mrf.mxu2 }
 0x1eb   :  { %v555_v13 = vmax.f32 %v516_v11, 0.0  ;;  %v1890_v14 = vadd.f32 %v1804_v21, %v716_v12 }
 0x1ed   :  { %1354 = vmatmul.msk.f32.gmra.mxu3 %vm317_vm2, %v555_v13  ;;  %v813_v15 = vsel %vm776_vm3, %v1890_v14, -inf }
 0x1ee   :  { %814 = vmax.xlane.f32.xlu0 %v813_v15 }
 0x1f0   :  { %v518_v17 = vpop.f32.mrf.mxu3 }
 0x1f1   :  { %v519_v18 = vadd.f32 %v1733_v27, %v518_v17 }
 0x1f2   :  { %v719_v19 = vpop.f32.mrf.mxu2 }
 0x1f3   :  { %v556_v20 = vmax.f32 %v519_v18, 0.0  ;;  %v1897_v22 = vadd.f32 %v1804_v21, %v719_v19 }
 0x1f5   :  { %1355 = vmatmul.msk.f32.gmra.mxu3 %vm317_vm2, %v556_v20  ;;  %v816_v24 = vsel %vm776_vm3, %v1897_v22, -inf }
 0x1f6   :  { %817 = vmax.xlane.f32.xlu1 %v816_v24 }
 0x1f8   :  { %v521_v25 = vpop.f32.mrf.mxu3 }
 0x1f9   :  { %v522_v26 = vadd.f32 %v1733_v27, %v521_v25 }
 0x1fa   :  { %v722_v28 = vpop.f32.mrf.mxu2 }
 0x1fb   :  { %v557_v29 = vmax.f32 %v522_v26, 0.0  ;;  %v1904_v31 = vadd.f32 %v1804_v21, %v722_v28 }
 0x1fd   :  { %1356 = vmatmul.msk.f32.gmra.mxu3 %vm317_vm2, %v557_v29  ;;  %v819_v32 = vsel %vm776_vm3, %v1904_v31, -inf }
 0x1fe   :  { %820 = vmax.xlane.f32.xlu2 %v819_v32 }
 0x200   :  { %v524_v33 = vpop.f32.mrf.mxu3 }
 0x201   :  { %v525_v34 = vadd.f32 %v1733_v27, %v524_v33  ;;  %v779_v35 = vpop.xlane.xlu0 %778 }
 0x202   :  { %v873_v37 = vsub.f32 %v1808_v4, %v779_v35  ;;  %v725_v38 = vpop.f32.mrf.mxu2 }
 0x203   :  { %v558_v39 = vmax.f32 %v525_v34, 0.0  ;;  %v1912_v40 = vadd.f32 %v1804_v21, %v725_v38 }
 0x204   :  { %v905_v41 = vmul.f32 1.442695, %v873_v37 }
 0x205   :  { %1357 = vmatmul.msk.f32.gmra.mxu3 %vm317_vm2, %v558_v39  ;;  %v822_v43 = vsel %vm776_vm3, %v1912_v40, -inf }
 0x206   :  { %1370 = vpow2.f32 %v905_v41  ;;  %823 = vmax.xlane.f32.xlu0 %v822_v43 }
 0x209   :  { %v782_v44 = vpop.xlane.xlu0 %781 }
 0x20a   :  { %v874_v45 = vsub.f32 %v1815_v10, %v782_v44  ;;  %v728_v27 = vpop.f32.mrf.mxu2 }
 0x20b   :  { %v1919_v47 = vadd.f32 %v1804_v21, %v728_v27 }
 0x20c   :  { %v1921_v4 = vpop.eup %1370  ;;  %v907_v48 = vmul.f32 1.442695, %v874_v45 }
 0x20d   :  { %v825_v49 = vsel %vm776_vm3, %v1919_v47, -inf  ;;  %v969_v50 = vsel %vm776_vm3, %v1921_v4, 0.0 }
 0x20e   :  { %1372 = vpow2.f32 %v907_v48  ;;  %826 = vmax.xlane.f32.xlu1 %v825_v49  ;;  %970 = vadd.xlane.f32.xlu2 %v969_v50 }
 0x211   :  { %v785_v51 = vpop.xlane.xlu1 %784 }
 0x212   :  { %v875_v53 = vsub.f32 %v1822_v16, %v785_v51  ;;  %v731_v10 = vpop.f32.mrf.mxu2 }
 0x213   :  { %v1929_v54 = vadd.f32 %v1804_v21, %v731_v10 }
 0x214   :  { %v1931_v55 = vpop.eup %1372  ;;  %v909_v56 = vmul.f32 1.442695, %v875_v53 }
 0x215   :  { %v828_v57 = vsel %vm776_vm3, %v1929_v54, -inf  ;;  %v972_v59 = vsel %vm776_vm3, %v1931_v55, 0.0 }
 0x216   :  { %1374 = vpow2.f32 %v909_v56  ;;  %829 = vmax.xlane.f32.xlu2 %v828_v57  ;;  %973 = vadd.xlane.f32.xlu0 %v972_v59 }
 0x219   :  { %v788_v60 = vpop.xlane.xlu1 %787 }
 0x21a   :  { %v876_v61 = vsub.f32 %v1829_v23, %v788_v60  ;;  %v734_v16 = vpop.f32.mrf.mxu2 }
 0x21b   :  { %v1939_v62 = vadd.f32 %v1804_v21, %v734_v16 }
 0x21c   :  { %v1941_v63 = vpop.eup %1374  ;;  %v911_v1 = vmul.f32 1.442695, %v876_v61 }
 0x21d   :  { %v975_v2 = vsel %vm776_vm3, %v1941_v63, 0.0  ;;  %v831_v3 = vsel %vm776_vm3, %v1939_v62, -inf }
 0x21e   :  { %1376 = vpow2.f32 %v911_v1  ;;  %976 = vadd.xlane.f32.xlu1 %v975_v2  ;;  %832 = vmax.xlane.f32.xlu0 %v831_v3 }
 0x221   :  { %v791_v5 = vpop.xlane.xlu2 %790 }
 0x222   :  { %v877_v6 = vsub.f32 %v1836_v30, %v791_v5  ;;  %v737_v23 = vpop.f32.mrf.mxu2 }
 0x223   :  { %v1949_v8 = vadd.f32 %v1804_v21, %v737_v23 }
 0x224   :  { %v1951_v9 = vpop.eup %1376  ;;  %v913_v11 = vmul.f32 1.442695, %v877_v6 }
 0x225   :  { %v834_v12 = vsel %vm776_vm3, %v1949_v8, -inf  ;;  %v978_v13 = vsel %vm776_vm3, %v1951_v9, 0.0 }
 0x226   :  { %1378 = vpow2.f32 %v913_v11  ;;  %835 = vmax.xlane.f32.xlu1 %v834_v12  ;;  %979 = vadd.xlane.f32.xlu2 %v978_v13 }
 0x229   :  { %v794_v15 = vpop.xlane.xlu2 %793 }
 0x22a   :  { %v878_v17 = vsub.f32 %v1843_v36, %v794_v15  ;;  %v740_v30 = vpop.f32.mrf.mxu2 }
 0x22b   :  { %v1959_v18 = vadd.f32 %v1804_v21, %v740_v30 }
 0x22c   :  { %v1961_v19 = vpop.eup %1378  ;;  %v915_v20 = vmul.f32 1.442695, %v878_v17 }
 0x22d   :  { %v837_v24 = vsel %vm776_vm3, %v1959_v18, -inf  ;;  %v981_v25 = vsel %vm776_vm3, %v1961_v19, 0.0 }
 0x22e   :  { %1380 = vpow2.f32 %v915_v20  ;;  %838 = vmax.xlane.f32.xlu2 %v837_v24  ;;  %982 = vadd.xlane.f32.xlu0 %v981_v25 }
 0x231   :  { %v797_v26 = vpop.xlane.xlu0 %796 }
 0x232   :  { %v879_v28 = vsub.f32 %v1850_v42, %v797_v26  ;;  %v743_v36 = vpop.f32.mrf.mxu2 }
 0x233   :  { %v1969_v29 = vadd.f32 %v1804_v21, %v743_v36 }
 0x234   :  { %v1971_v32 = vpop.eup %1380  ;;  %v917_v33 = vmul.f32 1.442695, %v879_v28 }
 0x235   :  { %v984_v34 = vsel %vm776_vm3, %v1971_v32, 0.0  ;;  %v840_v35 = vsel %vm776_vm3, %v1969_v29, -inf }
 0x236   :  { %1382 = vpow2.f32 %v917_v33  ;;  %985 = vadd.xlane.f32.xlu1 %v984_v34  ;;  %841 = vmax.xlane.f32.xlu0 %v840_v35 }
 0x239   :  { %v800_v37 = vpop.xlane.xlu1 %799 }
 0x23a   :  { %v880_v38 = vsub.f32 %v1856_v46, %v800_v37  ;;  %v746_v42 = vpop.f32.mrf.mxu2 }
 0x23b   :  { %v1979_v39 = vadd.f32 %v1804_v21, %v746_v42 }
 0x23c   :  { %v1981_v41 = vpop.eup %1382  ;;  %v919_v43 = vmul.f32 1.442695, %v880_v38 }
 0x23d   :  { %v843_v44 = vsel %vm776_vm3, %v1979_v39, -inf  ;;  %v987_v45 = vsel %vm776_vm3, %v1981_v41, 0.0 }
 0x23e   :  { %1384 = vpow2.f32 %v919_v43  ;;  %844 = vmax.xlane.f32.xlu1 %v843_v44  ;;  %988 = vadd.xlane.f32.xlu2 %v987_v45 }
 0x241   :  { %v803_v27 = vpop.xlane.xlu2 %802 }
 0x242   :  { %v881_v48 = vsub.f32 %v1862_v52, %v803_v27  ;;  %v749_v46 = vpop.f32.mrf.mxu2 }
 0x243   :  { %v1989_v49 = vadd.f32 %v1804_v21, %v749_v46 }
 0x244   :  { %v1991_v50 = vpop.eup %1384  ;;  %v921_v51 = vmul.f32 1.442695, %v881_v48 }
 0x245   :  { %v990_v53 = vsel %vm776_vm3, %v1991_v50, 0.0  ;;  %v846_v10 = vsel %vm776_vm3, %v1989_v49, -inf }
 0x246   :  { %1386 = vpow2.f32 %v921_v51  ;;  %991 = vadd.xlane.f32.xlu0 %v990_v53  ;;  %847 = vmax.xlane.f32.xlu2 %v846_v10 }
 0x249   :  { %v806_v56 = vpop.xlane.xlu0 %805 }
 0x24a   :  { %v882_v57 = vsub.f32 %v1869_v58, %v806_v56 }
 0x24c   :  { %v1998_v52 = vpop.eup %1386  ;;  %v923_v59 = vmul.f32 1.442695, %v882_v57 }
 0x24d   :  { %v993_v60 = vsel %vm776_vm3, %v1998_v52, 0.0 }
 0x24e   :  { %1388 = vpow2.f32 %v923_v59  ;;  %994 = vadd.xlane.f32.xlu1 %v993_v60 }
 0x250   :  { %v752_v61 = vpop.f32.mrf.mxu3 }
 0x251   :  { %v2003_v16 = vadd.f32 %v1804_v21, %v752_v61  ;;  %v809_v1 = vpop.xlane.xlu1 %808 }
 0x252   :  { %v883_v2 = vsub.f32 %v1876_v0, %v809_v1 }
 0x253   :  { %v849_v3 = vsel %vm776_vm3, %v2003_v16, -inf }
 0x254   :  { %v2008_v5 = vpop.eup %1388  ;;  %v925_v58 = vmul.f32 1.442695, %v883_v2  ;;  %850 = vmax.xlane.f32.xlu0 %v849_v3 }
 0x255   :  { %v996_v6 = vsel %vm776_vm3, %v2008_v5, 0.0 }
 0x256   :  { %1390 = vpow2.f32 %v925_v58  ;;  %997 = vadd.xlane.f32.xlu2 %v996_v6 }
 0x258   :  { %v755_v23 = vpop.f32.mrf.mxu3 }
 0x259   :  { %v2013_v11 = vadd.f32 %v1804_v21, %v755_v23  ;;  %v812_v36 = vpop.xlane.xlu2 %811 }
 0x25a   :  { %v884_v10 = vsub.f32 %v1883_v7, %v812_v36 }
 0x25b   :  { %v852_v12 = vsel %vm776_vm3, %v2013_v11, -inf }
 0x25c   :  { %v2017_v0 = vpop.eup %1390  ;;  %853 = vmax.xlane.f32.xlu1 %v852_v12  ;;  %v927_v1 = vmul.f32 1.442695, %v884_v10 }
 0x25d   :  { %v999_v13 = vsel %vm776_vm3, %v2017_v0, 0.0 }
 0x25e   :  { %1000 = vadd.xlane.f32.xlu0 %v999_v13 }
 0x260   :  { %v758_v15 = vpop.f32.mrf.mxu3 }
 0x261   :  { %v2022_v17 = vadd.f32 %v1804_v21, %v758_v15  ;;  %v815_v26 = vpop.xlane.xlu0 %814 }
 0x262   :  { %v885_v34 = vsub.f32 %v1890_v14, %v815_v26 }
 0x263   :  { %v855_v30 = vsel %vm776_vm3, %v2022_v17, -inf }
 0x264   :  { %856 = vmax.xlane.f32.xlu2 %v855_v30  ;;  %v929_v37 = vmul.f32 1.442695, %v885_v34 }
 0x266   :  { %1392 = vpow2.f32 %v929_v37 }
 0x268   :  { %v761_v20 = vpop.f32.mrf.mxu3 }
 0x269   :  { %v2027_v24 = vadd.f32 %v1804_v21, %v761_v20  ;;  %v818_v38 = vpop.xlane.xlu1 %817 }
 0x26a   :  { %v886_v43 = vsub.f32 %v1897_v22, %v818_v38 }
 0x26b   :  { %v858_v25 = vsel %vm776_vm3, %v2027_v24, -inf }
 0x26c   :  { %859 = vmax.xlane.f32.xlu0 %v858_v25  ;;  %v931_v46 = vmul.f32 1.442695, %v886_v43  ;;  %v2044_v53 = vpop.eup %1392 }
 0x26d   :  { %v1005_v61 = vsel %vm776_vm3, %v2044_v53, 0.0 }
 0x26e   :  { %1394 = vpow2.f32 %v931_v46 }
 0x270   :  { %v764_v28 = vpop.f32.mrf.mxu3 }
 0x271   :  { %v2032_v33 = vadd.f32 %v1804_v21, %v764_v28  ;;  %v821_v44 = vpop.xlane.xlu2 %820 }
 0x273   :  { %v861_v35 = vsel %vm776_vm3, %v2032_v33, -inf }
 0x274   :  { %862 = vmax.xlane.f32.xlu1 %v861_v35  ;;  %v2055_v2 = vpop.eup %1394 }
 0x275   :  { %v1008_v20 = vsel %vm776_vm3, %v2055_v2, 0.0 }
 0x278   :  { %v767_v42 = vpop.f32.mrf.mxu3 }
 0x279   :  { %v2039_v45 = vadd.f32 %v1804_v21, %v767_v42  ;;  %v824_v27 = vpop.xlane.xlu0 %823 }
 0x27a   :  { %v888_v48 = vsub.f32 %v1912_v40, %v824_v27 }
 0x27b   :  { %v864_v14 = vsel %vm776_vm3, %v2039_v45, -inf }
 0x27c   :  { %865 = vmax.xlane.f32.xlu2 %v864_v14  ;;  %v935_v51 = vmul.f32 1.442695, %v888_v48 }
 0x280   :  { %v770_v56 = vpop.f32.mrf.mxu3 }
 0x281   :  { %v2048_v22 = vadd.f32 %v1804_v21, %v770_v56  ;;  %v827_v57 = vpop.xlane.xlu1 %826  ;;  %v971_v59 = vpop.xlane.xlu2 %970 }
 0x282   :  { %v889_v60 = vsub.f32 %v1919_v47, %v827_v57  ;;  %1396 = vrcp.f32 %v971_v59  ;;  %v887_v47 = vsub.f32 %v1904_v31, %v821_v44 }
 0x283   :  { %1398 = vpow2.f32 %v935_v51  ;;  %v867_v40 = vsel %vm776_vm3, %v2048_v22, -inf }
 0x284   :  { %868 = vmax.xlane.f32.xlu0 %v867_v40  ;;  %1006 = vadd.xlane.f32.xlu2 %v1005_v61  ;;  %v937_v7 = vmul.f32 1.442695, %v889_v60  ;;  %1400 = vpow2.f32 %v927_v1  ;;  %v933_v31 = vmul.f32 1.442695, %v887_v47 }
 0x286   :  { %1402 = vpow2.f32 %v937_v7 }
 0x288   :  { %v1397_v3 = vpop.eup %1396  ;;  %v773_v58 = vpop.f32.mrf.mxu3 }
 0x289   :  { %v2057_v6 = vpop.eup %1398  ;;  %v1097_v23 = vmul.f32 %v1397_v3, %v971_v59  ;;  %v2061_v12 = vadd.f32 %v1804_v21, %v773_v58  ;;  %v974_v13 = vpop.xlane.xlu0 %973 }
 0x28a   :  { %1404 = vrcp.f32 %v974_v13  ;;  %v1014_v25 = vsel %vm776_vm3, %v2057_v6, 0.0  ;;  %v2069_v28 = vpop.eup %1400  ;;  %v830_v21 = vpop.xlane.xlu2 %829 }
 0x28b   :  { %v1129_v15 = vsub.f32 2.0, %v1097_v23  ;;  %v870_v30 = vsel %vm776_vm3, %v2061_v12, -inf  ;;  %1406 = vpow2.f32 %v933_v31  ;;  %v890_v37 = vsub.f32 %v1929_v54, %v830_v21 }
 0x28c   :  { %871 = vmax.xlane.f32.xlu1 %v870_v30  ;;  %1009 = vadd.xlane.f32.xlu0 %v1008_v20  ;;  %v2071_v36 = vpop.eup %1402  ;;  %v1002_v48 = vsel %vm776_vm3, %v2069_v28, 0.0 }
 0x28d   :  { %v1161_v26 = vmul.f32 %v1397_v3, %v1129_v15  ;;  %1015 = vadd.xlane.f32.xlu2 %v1014_v25  ;;  %v939_v46 = vmul.f32 1.442695, %v890_v37 }
 0x28f   :  { %v1193_v34 = vmul.f32 %v1921_v4, %v1161_v26  ;;  %v1017_v4 = vsel %vm776_vm3, %v2071_v36, 0.0 }
 0x290   :  { %v1405_v35 = vpop.eup %1404 }
 0x291   :  { %1225 = vst.msk [vmem:[%s2323_s7] sm:$0xff] %vm776_vm3, %v1193_v34  ;;  %v1098_v38 = vmul.f32 %v1405_v35, %v974_v13  ;;  %v977_v42 = vpop.xlane.xlu1 %976  ;;  %v833_v43 = vpop.xlane.xlu0 %832 }
 0x292   :  { %1408 = vrcp.f32 %v977_v42  ;;  %v891_v44 = vsub.f32 %v1939_v62, %v833_v43  ;;  %v2084_v54 = vpop.eup %1406 }
 0x293   :  { %v1130_v27 = vsub.f32 2.0, %v1098_v38  ;;  %v1011_v61 = vsel %vm776_vm3, %v2084_v54, 0.0 }
 0x294   :  { %v941_v14 = vmul.f32 1.442695, %v891_v44  ;;  %1003 = vadd.xlane.f32.xlu1 %v1002_v48  ;;  %1018 = vadd.xlane.f32.xlu0 %v1017_v4 }
 0x295   :  { %v1162_v51 = vmul.f32 %v1405_v35, %v1130_v27 }
 0x296   :  { %1410 = vpow2.f32 %v941_v14 }
 0x297   :  { %v1194_v10 = vmul.f32 %v1931_v55, %v1162_v51  ;;  %1412 = vpow2.f32 %v939_v46 }
 0x298   :  { %v1409_v56 = vpop.eup %1408 }
 0x299   :  { %1226 = vst.msk [vmem:[%s2323_s7 + $0x8] sm:$0xff] %vm776_vm3, %v1194_v10  ;;  %v1099_v62 = vmul.f32 %v1409_v56, %v977_v42  ;;  %v836_v57 = vpop.xlane.xlu1 %835  ;;  %v980_v59 = vpop.xlane.xlu2 %979 }
 0x29a   :  { %v892_v60 = vsub.f32 %v1949_v8, %v836_v57  ;;  %1414 = vrcp.f32 %v980_v59 }
 0x29b   :  { %v1131_v40 = vsub.f32 2.0, %v1099_v62 }
 0x29c   :  { %v2094_v1 = vpop.eup %1410  ;;  %v943_v55 = vmul.f32 1.442695, %v892_v60  ;;  %1012 = vadd.xlane.f32.xlu1 %v1011_v61 }
 0x29d   :  { %v1163_v7 = vmul.f32 %v1409_v56, %v1131_v40  ;;  %v1023_v3 = vsel %vm776_vm3, %v2094_v1, 0.0  ;;  %v2098_v58 = vpop.eup %1412 }
 0x29e   :  { %1416 = vpow2.f32 %v943_v55  ;;  %1024 = vadd.xlane.f32.xlu2 %v1023_v3  ;;  %v1020_v25 = vsel %vm776_vm3, %v2098_v58, 0.0 }
 0x29f   :  { %v1195_v47 = vmul.f32 %v1941_v63, %v1163_v7 }
 0x2a0   :  { %v1415_v8 = vpop.eup %1414 }
 0x2a1   :  { %1227 = vst.msk [vmem:[%s2323_s7 + $0x10] sm:$0xff] %vm776_vm3, %v1195_v47  ;;  %v1100_v23 = vmul.f32 %v1415_v8, %v980_v59  ;;  %v839_v13 = vpop.xlane.xlu2 %838  ;;  %v983_v15 = vpop.xlane.xlu0 %982 }
 0x2a2   :  { %v893_v30 = vsub.f32 %v1959_v18, %v839_v13  ;;  %1418 = vrcp.f32 %v983_v15 }
 0x2a3   :  { %v1132_v20 = vsub.f32 2.0, %v1100_v23 }
 0x2a4   :  { %v2108_v31 = vpop.eup %1416  ;;  %v945_v26 = vmul.f32 1.442695, %v893_v30  ;;  %1021 = vadd.xlane.f32.xlu1 %v1020_v25 }
 0x2a5   :  { %v1164_v63 = vmul.f32 %v1415_v8, %v1132_v20  ;;  %v1026_v21 = vsel %vm776_vm3, %v2108_v31, 0.0 }
 0x2a6   :  { %1420 = vpow2.f32 %v945_v26  ;;  %1027 = vadd.xlane.f32.xlu0 %v1026_v21 }
 0x2a7   :  { %v1196_v34 = vmul.f32 %v1951_v9, %v1164_v63 }
 0x2a8   :  { %v1419_v35 = vpop.eup %1418 }
 0x2a9   :  { %1228 = vst.msk [vmem:[%s2323_s7 + $0x18] sm:$0xff] %vm776_vm3, %v1196_v34  ;;  %v1101_v18 = vmul.f32 %v1419_v35, %v983_v15  ;;  %v986_v37 = vpop.xlane.xlu1 %985  ;;  %v842_v38 = vpop.xlane.xlu0 %841 }
 0x2aa   :  { %1422 = vrcp.f32 %v986_v37  ;;  %v894_v42 = vsub.f32 %v1969_v29, %v842_v38 }
 0x2ab   :  { %v1133_v43 = vsub.f32 2.0, %v1101_v18 }
 0x2ac   :  { %v2118_v44 = vpop.eup %1420  ;;  %v947_v27 = vmul.f32 1.442695, %v894_v42 }
 0x2ad   :  { %v1165_v48 = vmul.f32 %v1419_v35, %v1133_v43  ;;  %v1029_v9 = vsel %vm776_vm3, %v2118_v44, 0.0 }
 0x2ae   :  { %1424 = vpow2.f32 %v947_v27  ;;  %1030 = vadd.xlane.f32.xlu1 %v1029_v9 }
 0x2af   :  { %v1197_v4 = vmul.f32 %v1961_v19, %v1165_v48 }
 0x2b0   :  { %v1423_v14 = vpop.eup %1422 }
 0x2b1   :  { %1229 = vst.msk [vmem:[%s2323_s7 + $0x20] sm:$0xff] %vm776_vm3, %v1197_v4  ;;  %v1102_v46 = vmul.f32 %v1423_v14, %v986_v37  ;;  %v845_v29 = vpop.xlane.xlu1 %844  ;;  %v989_v51 = vpop.xlane.xlu2 %988 }
 0x2b2   :  { %v895_v10 = vsub.f32 %v1979_v39, %v845_v29  ;;  %1426 = vrcp.f32 %v989_v51 }
 0x2b3   :  { %v1134_v56 = vsub.f32 2.0, %v1102_v46 }
 0x2b4   :  { %v2128_v62 = vpop.eup %1424  ;;  %v949_v57 = vmul.f32 1.442695, %v895_v10 }
 0x2b5   :  { %v1166_v59 = vmul.f32 %v1423_v14, %v1134_v56  ;;  %v1032_v19 = vsel %vm776_vm3, %v2128_v62, 0.0 }
 0x2b6   :  { %1428 = vpow2.f32 %v949_v57  ;;  %1033 = vadd.xlane.f32.xlu2 %v1032_v19 }
 0x2b7   :  { %v1198_v60 = vmul.f32 %v1971_v32, %v1166_v59 }
 0x2b8   :  { %v1427_v40 = vpop.eup %1426 }
 0x2b9   :  { %1230 = vst.msk [vmem:[%s2323_s7 + $0x28] sm:$0xff] %vm776_vm3, %v1198_v60  ;;  %v1103_v39 = vmul.f32 %v1427_v40, %v989_v51  ;;  %v848_v61 = vpop.xlane.xlu2 %847  ;;  %v992_v55 = vpop.xlane.xlu0 %991 }
 0x2ba   :  { %v896_v7 = vsub.f32 %v1989_v49, %v848_v61  ;;  %1430 = vrcp.f32 %v992_v55 }
 0x2bb   :  { %v1135_v3 = vsub.f32 2.0, %v1103_v39 }
 0x2bc   :  { %v2138_v47 = vpop.eup %1428  ;;  %v951_v8 = vmul.f32 1.442695, %v896_v7 }
 0x2bd   :  { %v1167_v23 = vmul.f32 %v1427_v40, %v1135_v3  ;;  %v1035_v32 = vsel %vm776_vm3, %v2138_v47, 0.0 }
 0x2be   :  { %1432 = vpow2.f32 %v951_v8  ;;  %1036 = vadd.xlane.f32.xlu0 %v1035_v32 }
 0x2bf   :  { %v1199_v13 = vmul.f32 %v1981_v41, %v1167_v23 }
 0x2c0   :  { %v1431_v15 = vpop.eup %1430 }
 0x2c1   :  { %1231 = vst.msk [vmem:[%s2323_s7 + $0x30] sm:$0xff] %vm776_vm3, %v1199_v13  ;;  %v1104_v49 = vmul.f32 %v1431_v15, %v992_v55  ;;  %v995_v30 = vpop.xlane.xlu1 %994 }
 0x2c2   :  { %1434 = vrcp.f32 %v995_v30 }
 0x2c3   :  { %v1136_v20 = vsub.f32 2.0, %v1104_v49 }
 0x2c4   :  { %v2147_v25 = vpop.eup %1432 }
 0x2c5   :  { %v1168_v26 = vmul.f32 %v1431_v15, %v1136_v20  ;;  %v1038_v63 = vsel %vm776_vm3, %v2147_v25, 0.0 }
 0x2c6   :  { %1039 = vadd.xlane.f32.xlu1 %v1038_v63 }
 0x2c7   :  { %v1200_v21 = vmul.f32 %v1991_v50, %v1168_v26  ;;  %v851_v41 = vpop.xlane.xlu0 %850 }
 0x2c8   :  { %v1435_v34 = vpop.eup %1434  ;;  %v897_v35 = vsub.f32 %v2003_v16, %v851_v41 }
 0x2c9   :  { %1232 = vst.msk [vmem:[%s2323_s7 + $0x38] sm:$0xff] %vm776_vm3, %v1200_v21  ;;  %v1105_v18 = vmul.f32 %v1435_v34, %v995_v30  ;;  %v998_v37 = vpop.xlane.xlu2 %997 }
 0x2ca   :  { %v953_v38 = vmul.f32 1.442695, %v897_v35  ;;  %1436 = vrcp.f32 %v998_v37 }
 0x2cb   :  { %v1137_v42 = vsub.f32 2.0, %v1105_v18 }
 0x2cc   :  { %1438 = vpow2.f32 %v953_v38 }
 0x2cd   :  { %v1169_v43 = vmul.f32 %v1435_v34, %v1137_v42 }
 0x2cf   :  { %v1201_v27 = vmul.f32 %v1998_v52, %v1169_v43  ;;  %v854_v48 = vpop.xlane.xlu1 %853 }
 0x2d0   :  { %v1437_v50 = vpop.eup %1436  ;;  %v898_v9 = vsub.f32 %v2013_v11, %v854_v48 }
 0x2d1   :  { %1233 = vst.msk [vmem:[%s2323_s7 + $0x40] sm:$0xff] %vm776_vm3, %v1201_v27  ;;  %v1106_v16 = vmul.f32 %v1437_v50, %v998_v37  ;;  %v1001_v4 = vpop.xlane.xlu0 %1000 }
 0x2d2   :  { %v2163_v14 = vpop.eup %1438  ;;  %v955_v46 = vmul.f32 1.442695, %v898_v9  ;;  %1440 = vrcp.f32 %v1001_v4 }
 0x2d3   :  { %v1138_v29 = vsub.f32 2.0, %v1106_v16  ;;  %v1041_v51 = vsel %vm776_vm3, %v2163_v14, 0.0 }
 0x2d4   :  { %1442 = vpow2.f32 %v955_v46  ;;  %1042 = vadd.xlane.f32.xlu2 %v1041_v51 }
 0x2d5   :  { %v1170_v52 = vmul.f32 %v1437_v50, %v1138_v29 }
 0x2d7   :  { %v1202_v11 = vmul.f32 %v2008_v5, %v1170_v52  ;;  %v857_v10 = vpop.xlane.xlu2 %856 }
 0x2d8   :  { %v1441_v56 = vpop.eup %1440  ;;  %v899_v57 = vsub.f32 %v2022_v17, %v857_v10 }
 0x2d9   :  { %1234 = vst.msk [vmem:[%s2323_s7 + $0x48] sm:$0xff] %vm776_vm3, %v1202_v11  ;;  %v1107_v59 = vmul.f32 %v1441_v56, %v1001_v4 }
 0x2da   :  { %v2173_v19 = vpop.eup %1442  ;;  %v957_v60 = vmul.f32 1.442695, %v899_v57 }
 0x2db   :  { %v1139_v40 = vsub.f32 2.0, %v1107_v59  ;;  %v1044_v39 = vsel %vm776_vm3, %v2173_v19, 0.0 }
 0x2dc   :  { %1444 = vpow2.f32 %v957_v60  ;;  %1045 = vadd.xlane.f32.xlu0 %v1044_v39 }
 0x2dd   :  { %v1171_v5 = vmul.f32 %v1441_v56, %v1139_v40 }
 0x2df   :  { %v1203_v61 = vmul.f32 %v2017_v0, %v1171_v5  ;;  %v860_v55 = vpop.xlane.xlu0 %859 }
 0x2e0   :  { %v900_v17 = vsub.f32 %v2027_v24, %v860_v55 }
 0x2e1   :  { %1235 = vst.msk [vmem:[%s2323_s7 + $0x50] sm:$0xff] %vm776_vm3, %v1203_v61 }
 0x2e2   :  { %v2183_v7 = vpop.eup %1444  ;;  %v959_v3 = vmul.f32 1.442695, %v900_v17 }
 0x2e3   :  { %v1047_v8 = vsel %vm776_vm3, %v2183_v7, 0.0 }
 0x2e4   :  { %1446 = vpow2.f32 %v959_v3  ;;  %1048 = vadd.xlane.f32.xlu1 %v1047_v8 }
 0x2e7   :  { %v863_v23 = vpop.xlane.xlu1 %862 }
 0x2e8   :  { %v901_v32 = vsub.f32 %v2032_v33, %v863_v23 }
 0x2ea   :  { %v2188_v0 = vpop.eup %1446  ;;  %v961_v13 = vmul.f32 1.442695, %v901_v32 }
 0x2eb   :  { %v1050_v24 = vsel %vm776_vm3, %v2188_v0, 0.0 }
 0x2ec   :  { %1448 = vpow2.f32 %v961_v13  ;;  %1051 = vadd.xlane.f32.xlu2 %v1050_v24 }
 0x2ef   :  { %v866_v15 = vpop.xlane.xlu2 %865 }
 0x2f0   :  { %v902_v49 = vsub.f32 %v2039_v45, %v866_v15 }
 0x2f2   :  { %v2193_v30 = vpop.eup %1448  ;;  %v963_v20 = vmul.f32 1.442695, %v902_v49 }
 0x2f3   :  { %v1053_v26 = vsel %vm776_vm3, %v2193_v30, 0.0 }
 0x2f4   :  { %1450 = vpow2.f32 %v963_v20  ;;  %1054 = vadd.xlane.f32.xlu0 %v1053_v26 }
 0x2f7   :  { %v1007_v33 = vpop.xlane.xlu2 %1006  ;;  %v869_v63 = vpop.xlane.xlu0 %868 }
 0x2f8   :  { %1452 = vrcp.f32 %v1007_v33  ;;  %v903_v21 = vsub.f32 %v2048_v22, %v869_v63 }
 0x2fa   :  { %v2198_v41 = vpop.eup %1450  ;;  %v965_v34 = vmul.f32 1.442695, %v903_v21 }
 0x2fb   :  { %v1056_v35 = vsel %vm776_vm3, %v2198_v41, 0.0 }
 0x2fc   :  { %1454 = vpow2.f32 %v965_v34  ;;  %1057 = vadd.xlane.f32.xlu1 %v1056_v35 }
 0x2fe   :  { %v1453_v45 = vpop.eup %1452 }
 0x2ff   :  { %v1109_v18 = vmul.f32 %v1453_v45, %v1007_v33  ;;  %v872_v37 = vpop.xlane.xlu1 %871  ;;  %v1010_v38 = vpop.xlane.xlu0 %1009 }
 0x300   :  { %v904_v42 = vsub.f32 %v2061_v12, %v872_v37  ;;  %v1016_v43 = vpop.xlane.xlu2 %1015  ;;  %1456 = vrcp.f32 %v1010_v38 }
 0x301   :  { %v1141_v27 = vsub.f32 2.0, %v1109_v18  ;;  %1458 = vrcp.f32 %v1016_v43 }
 0x302   :  { %v2203_v48 = vpop.eup %1454  ;;  %v967_v22 = vmul.f32 1.442695, %v904_v42 }
 0x303   :  { %v1173_v50 = vmul.f32 %v1453_v45, %v1141_v27  ;;  %v1059_v9 = vsel %vm776_vm3, %v2203_v48, 0.0 }
 0x304   :  { %1460 = vpow2.f32 %v967_v22  ;;  %1060 = vadd.xlane.f32.xlu2 %v1059_v9 }
 0x305   :  { %v1205_v16 = vmul.f32 %v2044_v53, %v1173_v50 }
 0x306   :  { %v1457_v4 = vpop.eup %1456 }
 0x307   :  { %v1459_v46 = vpop.eup %1458  ;;  %1237 = vst.msk [vmem:[%s2323_s7 + $0x60] sm:$0xff] %vm776_vm3, %v1205_v16  ;;  %v1110_v12 = vmul.f32 %v1457_v4, %v1010_v38  ;;  %v1004_v29 = vpop.xlane.xlu1 %1003 }
 0x308   :  { %v1019_v51 = vpop.xlane.xlu0 %1018  ;;  %v1112_v52 = vmul.f32 %v1459_v46, %v1016_v43  ;;  %1462 = vrcp.f32 %v1004_v29 }
 0x309   :  { %v1142_v11 = vsub.f32 2.0, %v1110_v12  ;;  %1464 = vrcp.f32 %v1019_v51 }
 0x30a   :  { %v2212_v10 = vpop.eup %1460  ;;  %v1144_v56 = vsub.f32 2.0, %v1112_v52 }
 0x30b   :  { %v1174_v57 = vmul.f32 %v1457_v4, %v1142_v11  ;;  %v1062_v53 = vsel %vm776_vm3, %v2212_v10, 0.0 }
 0x30c   :  { %v1176_v59 = vmul.f32 %v1459_v46, %v1144_v56  ;;  %1063 = vadd.xlane.f32.xlu0 %v1062_v53 }
 0x30d   :  { %v1206_v60 = vmul.f32 %v2055_v2, %v1174_v57 }
 0x30e   :  { %v1463_v40 = vpop.eup %1462  ;;  %v1208_v39 = vmul.f32 %v2057_v6, %v1176_v59 }
 0x30f   :  { %v1465_v5 = vpop.eup %1464  ;;  %1238 = vst.msk [vmem:[%s2323_s7 + $0x68] sm:$0xff] %vm776_vm3, %v1206_v60  ;;  %v1108_v61 = vmul.f32 %v1463_v40, %v1004_v29  ;;  %v1013_v55 = vpop.xlane.xlu1 %1012 }
 0x310   :  { %1240 = vst.msk [vmem:[%s2323_s7 + $0x78] sm:$0xff] %vm776_vm3, %v1208_v39  ;;  %v1113_v17 = vmul.f32 %v1465_v5, %v1019_v51  ;;  %1466 = vrcp.f32 %v1013_v55 }
 0x311   :  { %v1140_v3 = vsub.f32 2.0, %v1108_v61  ;;  %v1025_v2 = vpop.xlane.xlu2 %1024 }
 0x312   :  { %v1145_v8 = vsub.f32 2.0, %v1113_v17  ;;  %1468 = vrcp.f32 %v1025_v2 }
 0x313   :  { %v1172_v6 = vmul.f32 %v1463_v40, %v1140_v3 }
 0x314   :  { %v1177_v23 = vmul.f32 %v1465_v5, %v1145_v8 }
 0x315   :  { %v1204_v32 = vmul.f32 %v2069_v28, %v1172_v6 }
 0x316   :  { %v1467_v13 = vpop.eup %1466  ;;  %v1209_v24 = vmul.f32 %v2071_v36, %v1177_v23 }
 0x317   :  { %1236 = vst.msk [vmem:[%s2323_s7 + $0x58] sm:$0xff] %vm776_vm3, %v1204_v32  ;;  %v1111_v15 = vmul.f32 %v1467_v13, %v1013_v55  ;;  %v1022_v49 = vpop.xlane.xlu1 %1021 }
 0x318   :  { %v1469_v20 = vpop.eup %1468  ;;  %1241 = vst.msk [vmem:[%s2323_s7 + $0x80] sm:$0xff] %vm776_vm3, %v1209_v24  ;;  %1470 = vrcp.f32 %v1022_v49 }
 0x319   :  { %v1143_v26 = vsub.f32 2.0, %v1111_v15  ;;  %v1115_v33 = vmul.f32 %v1469_v20, %v1025_v2  ;;  %v1028_v28 = vpop.xlane.xlu0 %1027 }
 0x31a   :  { %1472 = vrcp.f32 %v1028_v28 }
 0x31b   :  { %v1175_v63 = vmul.f32 %v1467_v13, %v1143_v26  ;;  %v1147_v36 = vsub.f32 2.0, %v1115_v33 }
 0x31d   :  { %v1207_v21 = vmul.f32 %v2084_v54, %v1175_v63  ;;  %v1179_v34 = vmul.f32 %v1469_v20, %v1147_v36 }
 0x31e   :  { %v1471_v35 = vpop.eup %1470 }
 0x31f   :  { %1239 = vst.msk [vmem:[%s2323_s7 + $0x70] sm:$0xff] %vm776_vm3, %v1207_v21  ;;  %v1211_v45 = vmul.f32 %v2094_v1, %v1179_v34  ;;  %v1114_v18 = vmul.f32 %v1471_v35, %v1022_v49 }
 0x320   :  { %v1473_v37 = vpop.eup %1472 }
 0x321   :  { %1243 = vst.msk [vmem:[%s2323_s7 + $0x90] sm:$0xff] %vm776_vm3, %v1211_v45  ;;  %v1146_v38 = vsub.f32 2.0, %v1114_v18  ;;  %v1116_v42 = vmul.f32 %v1473_v37, %v1028_v28  ;;  %v1031_v43 = vpop.xlane.xlu1 %1030 }
 0x322   :  { %1474 = vrcp.f32 %v1031_v43 }
 0x323   :  { %v1178_v54 = vmul.f32 %v1471_v35, %v1146_v38  ;;  %v1148_v27 = vsub.f32 2.0, %v1116_v42 }
 0x325   :  { %v1210_v22 = vmul.f32 %v2098_v58, %v1178_v54  ;;  %v1180_v50 = vmul.f32 %v1473_v37, %v1148_v27 }
 0x327   :  { %1242 = vst.msk [vmem:[%s2323_s7 + $0x88] sm:$0xff] %vm776_vm3, %v1210_v22  ;;  %v1212_v1 = vmul.f32 %v2108_v31, %v1180_v50 }
 0x328   :  { %v1475_v9 = vpop.eup %1474 }
 0x329   :  { %1244 = vst.msk [vmem:[%s2323_s7 + $0x98] sm:$0xff] %vm776_vm3, %v1212_v1  ;;  %v1117_v16 = vmul.f32 %v1475_v9, %v1031_v43  ;;  %v1034_v4 = vpop.xlane.xlu2 %1033 }
 0x32a   :  { %1476 = vrcp.f32 %v1034_v4 }
 0x32b   :  { %v1149_v46 = vsub.f32 2.0, %v1117_v16 }
 0x32d   :  { %v1181_v12 = vmul.f32 %v1475_v9, %v1149_v46 }
 0x32f   :  { %v1213_v58 = vmul.f32 %v2118_v44, %v1181_v12 }
 0x330   :  { %v1477_v29 = vpop.eup %1476 }
 0x331   :  { %1245 = vst.msk [vmem:[%s2323_s7 + $0xa0] sm:$0xff] %vm776_vm3, %v1213_v58  ;;  %v1118_v31 = vmul.f32 %v1477_v29, %v1034_v4  ;;  %v1037_v51 = vpop.xlane.xlu0 %1036 }
 0x332   :  { %1478 = vrcp.f32 %v1037_v51 }
 0x333   :  { %v1150_v52 = vsub.f32 2.0, %v1118_v31 }
 0x335   :  { %v1182_v11 = vmul.f32 %v1477_v29, %v1150_v52 }
 0x337   :  { %v1214_v56 = vmul.f32 %v2128_v62, %v1182_v11 }
 0x338   :  { %v1479_v57 = vpop.eup %1478 }
 0x339   :  { %1246 = vst.msk [vmem:[%s2323_s7 + $0xa8] sm:$0xff] %vm776_vm3, %v1214_v56  ;;  %v1119_v44 = vmul.f32 %v1479_v57, %v1037_v51  ;;  %v1040_v53 = vpop.xlane.xlu1 %1039 }
 0x33a   :  { %1480 = vrcp.f32 %v1040_v53 }
 0x33b   :  { %v1151_v59 = vsub.f32 2.0, %v1119_v44 }
 0x33d   :  { %v1183_v60 = vmul.f32 %v1479_v57, %v1151_v59 }
 0x33f   :  { %v1215_v40 = vmul.f32 %v2138_v47, %v1183_v60 }
 0x340   :  { %v1481_v39 = vpop.eup %1480 }
 0x341   :  { %1247 = vst.msk [vmem:[%s2323_s7 + $0xb0] sm:$0xff] %vm776_vm3, %v1215_v40  ;;  %v1120_v62 = vmul.f32 %v1481_v39, %v1040_v53 }
 0x343   :  { %v1152_v5 = vsub.f32 2.0, %v1120_v62 }
 0x345   :  { %v1184_v61 = vmul.f32 %v1481_v39, %v1152_v5 }
 0x347   :  { %v1216_v55 = vmul.f32 %v2147_v25, %v1184_v61  ;;  %v1043_v17 = vpop.xlane.xlu2 %1042 }
 0x348   :  { %1482 = vrcp.f32 %v1043_v17 }
 0x349   :  { %1248 = vst.msk [vmem:[%s2323_s7 + $0xb8] sm:$0xff] %vm776_vm3, %v1216_v55 }
 0x34e   :  { %v1483_v3 = vpop.eup %1482 }
 0x34f   :  { %v1121_v47 = vmul.f32 %v1483_v3, %v1043_v17  ;;  %v1046_v2 = vpop.xlane.xlu0 %1045 }
 0x350   :  { %1484 = vrcp.f32 %v1046_v2 }
 0x351   :  { %v1153_v8 = vsub.f32 2.0, %v1121_v47 }
 0x353   :  { %v1185_v6 = vmul.f32 %v1483_v3, %v1153_v8 }
 0x355   :  { %v1217_v23 = vmul.f32 %v2163_v14, %v1185_v6 }
 0x356   :  { %v1485_v32 = vpop.eup %1484 }
 0x357   :  { %1249 = vst.msk [vmem:[%s2323_s7 + $0xc0] sm:$0xff] %vm776_vm3, %v1217_v23  ;;  %v1122_v25 = vmul.f32 %v1485_v32, %v1046_v2  ;;  %v1049_v13 = vpop.xlane.xlu1 %1048 }
 0x358   :  { %1486 = vrcp.f32 %v1049_v13 }
 0x359   :  { %v1154_v24 = vsub.f32 2.0, %v1122_v25 }
 0x35b   :  { %v1186_v15 = vmul.f32 %v1485_v32, %v1154_v24 }
 0x35d   :  { %v1218_v49 = vmul.f32 %v2173_v19, %v1186_v15 }
 0x35e   :  { %v1487_v20 = vpop.eup %1486 }
 0x35f   :  { %1250 = vst.msk [vmem:[%s2323_s7 + $0xc8] sm:$0xff] %vm776_vm3, %v1218_v49  ;;  %v1123_v14 = vmul.f32 %v1487_v20, %v1049_v13  ;;  %v1052_v26 = vpop.xlane.xlu2 %1051 }
 0x360   :  { %1488 = vrcp.f32 %v1052_v26 }
 0x361   :  { %v1155_v33 = vsub.f32 2.0, %v1123_v14 }
 0x363   :  { %v1187_v28 = vmul.f32 %v1487_v20, %v1155_v33 }
 0x365   :  { %v1219_v63 = vmul.f32 %v2183_v7, %v1187_v28 }
 0x366   :  { %v1489_v36 = vpop.eup %1488 }
 0x367   :  { %1251 = vst.msk [vmem:[%s2323_s7 + $0xd0] sm:$0xff] %vm776_vm3, %v1219_v63  ;;  %v1124_v19 = vmul.f32 %v1489_v36, %v1052_v26  ;;  %v1055_v21 = vpop.xlane.xlu0 %1054 }
 0x368   :  { %1490 = vrcp.f32 %v1055_v21 }
 0x369   :  { %v1156_v34 = vsub.f32 2.0, %v1124_v19 }
 0x36b   :  { %v1188_v35 = vmul.f32 %v1489_v36, %v1156_v34 }
 0x36d   :  { %v1220_v45 = vmul.f32 %v2188_v0, %v1188_v35 }
 0x36e   :  { %v1491_v18 = vpop.eup %1490 }
 0x36f   :  { %1252 = vst.msk [vmem:[%s2323_s7 + $0xd8] sm:$0xff] %vm776_vm3, %v1220_v45  ;;  %v1125_v7 = vmul.f32 %v1491_v18, %v1055_v21  ;;  %v1058_v37 = vpop.xlane.xlu1 %1057 }
 0x370   :  { %1492 = vrcp.f32 %v1058_v37 }
 0x371   :  { %v1157_v38 = vsub.f32 2.0, %v1125_v7 }
 0x373   :  { %v1189_v42 = vmul.f32 %v1491_v18, %v1157_v38 }
 0x375   :  { %v1221_v43 = vmul.f32 %v2193_v30, %v1189_v42 }
 0x376   :  { %v1493_v54 = vpop.eup %1492 }
 0x377   :  { %1253 = vst.msk [vmem:[%s2323_s7 + $0xe0] sm:$0xff] %vm776_vm3, %v1221_v43  ;;  %v1126_v0 = vmul.f32 %v1493_v54, %v1058_v37  ;;  %v1061_v27 = vpop.xlane.xlu2 %1060 }
 0x378   :  { %1494 = vrcp.f32 %v1061_v27 }
 0x379   :  { %v1158_v22 = vsub.f32 2.0, %v1126_v0 }
 0x37b   :  { %v1190_v50 = vmul.f32 %v1493_v54, %v1158_v22 }
 0x37d   :  { %v1222_v1 = vmul.f32 %v2198_v41, %v1190_v50 }
 0x37e   :  { %v1495_v9 = vpop.eup %1494 }
 0x37f   :  { %1254 = vst.msk [vmem:[%s2323_s7 + $0xe8] sm:$0xff] %vm776_vm3, %v1222_v1  ;;  %v1127_v30 = vmul.f32 %v1495_v9, %v1061_v27  ;;  %v1064_v16 = vpop.xlane.xlu0 %1063 }
 0x380   :  { %1496 = vrcp.f32 %v1064_v16 }
 0x381   :  { %v1159_v4 = vsub.f32 2.0, %v1127_v30 }
 0x383   :  { %v1191_v46 = vmul.f32 %v1495_v9, %v1159_v4 }
 0x385   :  { %v1223_v12 = vmul.f32 %v2203_v48, %v1191_v46 }
 0x386   :  { %v1497_v58 = vpop.eup %1496 }
 0x387   :  { %1255 = vst.msk [vmem:[%s2323_s7 + $0xf0] sm:$0xff] %vm776_vm3, %v1223_v12  ;;  %v1128_v41 = vmul.f32 %v1497_v58, %v1064_v16 }
 0x389   :  { %v1160_v29 = vsub.f32 2.0, %v1128_v41 }
 0x38b   :  { %v1192_v31 = vmul.f32 %v1497_v58, %v1160_v29 }
 0x38d   :  { %v1224_v51 = vmul.f32 %v2212_v10, %v1192_v31 }
 0x38f   :  { %1256 = vst.msk [vmem:[%s2323_s7 + $0xf8] sm:$0xff] %vm776_vm3, %v1224_v51 }

</bundles_post_ra>
